<compile_context>
chip_gen: v6e
topology: v6e:2x2x1
jax: 0.10.0
libtpu: 0.0.40
codegen_flags: <defaults>
</compile_context>

<pallas_src>
import functools
import math

import jax
import jax.numpy as jnp
from jax.experimental import pallas as pl
from jax.experimental.pallas import tpu as pltpu

# ----------------------------- config ---------------------------------------
CONFIG = dict(
    vocab_size=100,
    hidden_size=32,
    num_layers=2,
    num_heads=2,
    intermediate_size=64,
    max_position=16,
    type_vocab_size=2,
    layer_norm_eps=1e-12,
)
NUM_LABELS = 3
LANE = 128  # vreg lane width; classifier output padded to this for dense stores


# --------------------------- in-kernel helpers -------------------------------
def _gelu(y):
    # TODO(synk): HF BERT defaults to exact erf-GELU; tanh approximation kept
    # for TPU-friendly EUP transcendentals (~1e-3 max difference).
    c = math.sqrt(2.0 / math.pi)
    return 0.5 * y * (1.0 + jnp.tanh(c * (y + 0.044715 * y * y * y)))


def _layernorm(h, g, b, eps):
    mu = jnp.mean(h, axis=-1, keepdims=True)
    var = jnp.mean((h - mu) * (h - mu), axis=-1, keepdims=True)
    return (h - mu) * jax.lax.rsqrt(var + eps) * g + b


# --------------------------- fused Pallas kernel -----------------------------
def bert_forward_kernel(x_ref, bias_ref,
                        emb_g_ref, emb_b_ref,
                        qkv_w_ref, qkv_b_ref, o_w_ref, o_b_ref,
                        ln1_g_ref, ln1_b_ref,
                        ff1_w_ref, ff1_b_ref, ff2_w_ref, ff2_b_ref,
                        ln2_g_ref, ln2_b_ref,
                        pool_w_ref, pool_b_ref, cls_w_ref, cls_b_ref,
                        probs_ref,
                        *, num_layers, num_heads, head_dim, eps):
    """One grid step == one batch element's full forward pass.

    x_ref:    (S, H)   embedded tokens (word + pos + type), pre-LayerNorm
    bias_ref: (1, S)   additive key mask, (1 - attn_mask) * -10000
    probs_ref:(1, 128) softmax probs, labels padded to the 128-lane width
    """
    H = num_heads * head_dim
    scale = 1.0 / math.sqrt(head_dim)

    x = x_ref[...]                                       # (S, H)
    bias = bias_ref[...]                                 # (1, S)

    # ---- embedding LayerNorm -------------------------------------------------
    x = _layernorm(x, emb_g_ref[...], emb_b_ref[...], eps)

    # ---- encoder layers (static unroll, num_layers is small) -----------------
    for l in range(num_layers):
        # fused QKV projection: one lane-dense (S, 3H) matmul
        qkv = jnp.dot(x, qkv_w_ref[l], preferred_element_type=jnp.float32)
        qkv = qkv + qkv_b_ref[l]

        o_w = o_w_ref[l]                                 # (H, H)
        attn = jnp.zeros_like(x)                         # (S, H)
        for h in range(num_heads):                       # static unroll
            lo = h * head_dim
            q = qkv[:, lo:lo + head_dim] * scale         # scale folded into q
            k = qkv[:, H + lo:H + lo + head_dim]
            v = qkv[:, 2 * H + lo:2 * H + lo + head_dim]
            # scores via dot_general contracting head dim (no explicit k.T)
            s = jax.lax.dot_general(q, k, (((1,), (1,)), ((), ())),
                                    preferred_element_type=jnp.float32)
            s = s + bias
            s = s - jnp.max(s, axis=-1, keepdims=True)
            p = jnp.exp(s)
            p = p / jnp.sum(p, axis=-1, keepdims=True)
            ctx = jnp.dot(p, v, preferred_element_type=jnp.float32)  # (S, d)
            # fold head back through its slice of the output projection
            attn = attn + jnp.dot(ctx, o_w[lo:lo + head_dim, :],
                                  preferred_element_type=jnp.float32)
        attn = attn + o_b_ref[l]
        x = _layernorm(x + attn, ln1_g_ref[l], ln1_b_ref[l], eps)

        # FFN: the (S, I) intermediate never leaves vregs/VMEM
        h1 = jnp.dot(x, ff1_w_ref[l], preferred_element_type=jnp.float32)
        h1 = _gelu(h1 + ff1_b_ref[l])
        h2 = jnp.dot(h1, ff2_w_ref[l], preferred_element_type=jnp.float32)
        h2 = h2 + ff2_b_ref[l]
        x = _layernorm(x + h2, ln2_g_ref[l], ln2_b_ref[l], eps)

    # ---- pooler ([CLS] linear+tanh) -> classifier -> softmax -----------------
    cls = x[0:1, :]                                       # (1, H)
    pooled = jnp.dot(cls, pool_w_ref[...], preferred_element_type=jnp.float32)
    pooled = jnp.tanh(pooled + pool_b_ref[...])
    logits = jnp.dot(pooled, cls_w_ref[...], preferred_element_type=jnp.float32)
    logits = logits + cls_b_ref[...]                      # padded lanes get -1e9
    logits = logits - jnp.max(logits, axis=-1, keepdims=True)
    e = jnp.exp(logits)
    probs_ref[...] = e / jnp.sum(e, axis=-1, keepdims=True)


# ------------------------------ model ---------------------------------------
def init_params(key, cfg, num_labels):
    H = cfg["hidden_size"]
    I = cfg["intermediate_size"]
    L = cfg["num_layers"]
    keys = iter(jax.random.split(key, 32))

    def nrm(shape):
        return jax.random.normal(next(keys), shape, jnp.float32) * 0.02

    return {
        "word_emb": nrm((cfg["vocab_size"], H)),
        "pos_emb": nrm((cfg["max_position"], H)),
        "type_emb": nrm((cfg["type_vocab_size"], H)),
        "emb_ln_g": jnp.ones((1, H), jnp.float32),
        "emb_ln_b": jnp.zeros((1, H), jnp.float32),
        # per-layer weights stacked on a leading (L, ...) axis
        "qkv_w": nrm((L, H, 3 * H)),                     # [Wq | Wk | Wv]
        "qkv_b": jnp.zeros((L, 1, 3 * H), jnp.float32),
        "o_w": nrm((L, H, H)),
        "o_b": jnp.zeros((L, 1, H), jnp.float32),
        "ln1_g": jnp.ones((L, 1, H), jnp.float32),
        "ln1_b": jnp.zeros((L, 1, H), jnp.float32),
        "ff1_w": nrm((L, H, I)),
        "ff1_b": jnp.zeros((L, 1, I), jnp.float32),
        "ff2_w": nrm((L, I, H)),
        "ff2_b": jnp.zeros((L, 1, H), jnp.float32),
        "ln2_g": jnp.ones((L, 1, H), jnp.float32),
        "ln2_b": jnp.zeros((L, 1, H), jnp.float32),
        "pool_w": nrm((H, H)),
        "pool_b": jnp.zeros((1, H), jnp.float32),
        "cls_w": nrm((H, num_labels)),
        "cls_b": jnp.zeros((num_labels,), jnp.float32),
    }


def bert_classifier_forward(params, input_ids, attention_mask, token_type_ids, *, cfg):
    B, S = input_ids.shape
    H = cfg["hidden_size"]
    I = cfg["intermediate_size"]
    L = cfg["num_layers"]
    nH = cfg["num_heads"]
    eps = cfg["layer_norm_eps"]
    head_dim = H // nH

    # embeddings (gathers are plain-JAX glue); dropout omitted (eval mode)
    emb = (jnp.take(params["word_emb"], input_ids, axis=0)
           + params["pos_emb"][jnp.arange(S)][None, :, :]
           + jnp.take(params["type_emb"], token_type_ids, axis=0)
           ).astype(jnp.float32)                          # (B, S, H)

    # extended attention mask: (1 - mask) * -10000, broadcast over query rows
    bias = ((1.0 - attention_mask.astype(jnp.float32)) * -10000.0).reshape(B, 1, S)

    # Lane-dense classifier: pad labels to 128 lanes; padded logits get a -1e9
    # bias so exp() underflows to 0 and the softmax matches the num_labels one.
    nl = params["cls_w"].shape[1]
    cls_w_pad = jnp.zeros((H, LANE), jnp.float32).at[:, :nl].set(params["cls_w"])
    cls_b_pad = jnp.full((1, LANE), -1e9, jnp.float32).at[0, :nl].set(params["cls_b"])

    def rep(shape):
        # weight/bias block: whole array, same block at every grid step
        return pl.BlockSpec(shape, lambda b: (0,) * len(shape))

    probs = pl.pallas_call(
        functools.partial(bert_forward_kernel, num_layers=L, num_heads=nH,
                          head_dim=head_dim, eps=eps),
        out_shape=jax.ShapeDtypeStruct((B, 1, LANE), jnp.float32),
        grid=(B,),
        in_specs=[
            pl.BlockSpec((None, S, H), lambda b: (b, 0, 0)),   # embedded x
            pl.BlockSpec((None, 1, S), lambda b: (b, 0, 0)),   # mask bias
            rep((1, H)), rep((1, H)),                          # emb LN gamma/beta
            rep((L, H, 3 * H)), rep((L, 1, 3 * H)),            # fused QKV w/b
            rep((L, H, H)), rep((L, 1, H)),                    # out proj w/b
            rep((L, 1, H)), rep((L, 1, H)),                    # LN1 gamma/beta
            rep((L, H, I)), rep((L, 1, I)),                    # FF1 w/b
            rep((L, I, H)), rep((L, 1, H)),                    # FF2 w/b
            rep((L, 1, H)), rep((L, 1, H)),                    # LN2 gamma/beta
            rep((H, H)), rep((1, H)),                          # pooler w/b
            rep((H, LANE)), rep((1, LANE)),                    # classifier (padded)
        ],
        out_specs=pl.BlockSpec((None, 1, LANE), lambda b: (b, 0, 0)),
        compiler_params=pltpu.CompilerParams(dimension_semantics=("parallel",)),
    )(emb, bias,
      params["emb_ln_g"], params["emb_ln_b"],
      params["qkv_w"], params["qkv_b"], params["o_w"], params["o_b"],
      params["ln1_g"], params["ln1_b"],
      params["ff1_w"], params["ff1_b"], params["ff2_w"], params["ff2_b"],
      params["ln2_g"], params["ln2_b"],
      params["pool_w"], params["pool_b"], cls_w_pad, cls_b_pad)

    return probs.reshape(B, LANE)[:, :NUM_LABELS]


# ------------------------------- main ----------------------------------------
if __name__ == "__main__":
    cfg = CONFIG
    B, S = 2, 8

    key = jax.random.PRNGKey(0)
    k_ids, k_params = jax.random.split(key)

    input_ids = jax.random.randint(k_ids, (B, S), 0, cfg["vocab_size"], dtype=jnp.int32)
    attention_mask = jnp.array([[1, 1, 1, 1, 1, 1, 1, 1],
                                [1, 1, 1, 1, 1, 0, 0, 0]], dtype=jnp.int32)
    token_type_ids = jnp.array([[0, 0, 0, 0, 1, 1, 1, 1],
                                [0, 0, 0, 0, 0, 0, 0, 0]], dtype=jnp.int32)

    params = init_params(k_params, cfg, NUM_LABELS)

    fwd = jax.jit(functools.partial(bert_classifier_forward, cfg=cfg))
    probs = fwd(params, input_ids, attention_mask, token_type_ids)
    jax.block_until_ready(probs)

    assert probs.shape == (B, NUM_LABELS)
    assert bool(jnp.all(jnp.isfinite(probs)))
    assert bool(jnp.allclose(jnp.sum(probs, axis=1), 1.0, atol=1e-5))
    print("KERNEL_OK")
</pallas_src>

<mosaic_0001>
module attributes {stable_mosaic.version = 11 : i64} {
  func.func @bert_forward_kernel(%arg0: i32, %arg1: memref<1x8x32xf32, #tpu.memory_space<vmem>>, %arg2: memref<1x1x8xf32, #tpu.memory_space<vmem>>, %arg3: memref<1x32xf32, #tpu.memory_space<vmem>>, %arg4: memref<1x32xf32, #tpu.memory_space<vmem>>, %arg5: memref<2x32x96xf32, #tpu.memory_space<vmem>>, %arg6: memref<2x1x96xf32, #tpu.memory_space<vmem>>, %arg7: memref<2x32x32xf32, #tpu.memory_space<vmem>>, %arg8: memref<2x1x32xf32, #tpu.memory_space<vmem>>, %arg9: memref<2x1x32xf32, #tpu.memory_space<vmem>>, %arg10: memref<2x1x32xf32, #tpu.memory_space<vmem>>, %arg11: memref<2x32x64xf32, #tpu.memory_space<vmem>>, %arg12: memref<2x1x64xf32, #tpu.memory_space<vmem>>, %arg13: memref<2x64x32xf32, #tpu.memory_space<vmem>>, %arg14: memref<2x1x32xf32, #tpu.memory_space<vmem>>, %arg15: memref<2x1x32xf32, #tpu.memory_space<vmem>>, %arg16: memref<2x1x32xf32, #tpu.memory_space<vmem>>, %arg17: memref<32x32xf32, #tpu.memory_space<vmem>>, %arg18: memref<1x32xf32, #tpu.memory_space<vmem>>, %arg19: memref<32x128xf32, #tpu.memory_space<vmem>>, %arg20: memref<1x128xf32, #tpu.memory_space<vmem>>, %arg21: memref<1x1x128xf32, #tpu.memory_space<vmem>>) attributes {dimension_semantics = [#tpu.dimension_semantics<parallel>], iteration_bounds = array<i64: 2>, scalar_prefetch = 0 : i64, scratch_operands = 0 : i64, tpu.core_type = #tpu.core_type<tc>, window_params = [{transform_indices = @transform_0, window_bounds = array<i64: 1, 8, 32>}, {transform_indices = @transform_1, window_bounds = array<i64: 1, 1, 8>}, {pipeline_mode = #tpu.pipeline_mode<synchronous>, transform_indices = @transform_2, window_bounds = array<i64: 1, 32>}, {pipeline_mode = #tpu.pipeline_mode<synchronous>, transform_indices = @transform_3, window_bounds = array<i64: 1, 32>}, {pipeline_mode = #tpu.pipeline_mode<synchronous>, transform_indices = @transform_4, window_bounds = array<i64: 2, 32, 96>}, {pipeline_mode = #tpu.pipeline_mode<synchronous>, transform_indices = @transform_5, window_bounds = array<i64: 2, 1, 96>}, {pipeline_mode = #tpu.pipeline_mode<synchronous>, transform_indices = @transform_6, window_bounds = array<i64: 2, 32, 32>}, {pipeline_mode = #tpu.pipeline_mode<synchronous>, transform_indices = @transform_7, window_bounds = array<i64: 2, 1, 32>}, {pipeline_mode = #tpu.pipeline_mode<synchronous>, transform_indices = @transform_8, window_bounds = array<i64: 2, 1, 32>}, {pipeline_mode = #tpu.pipeline_mode<synchronous>, transform_indices = @transform_9, window_bounds = array<i64: 2, 1, 32>}, {pipeline_mode = #tpu.pipeline_mode<synchronous>, transform_indices = @transform_10, window_bounds = array<i64: 2, 32, 64>}, {pipeline_mode = #tpu.pipeline_mode<synchronous>, transform_indices = @transform_11, window_bounds = array<i64: 2, 1, 64>}, {pipeline_mode = #tpu.pipeline_mode<synchronous>, transform_indices = @transform_12, window_bounds = array<i64: 2, 64, 32>}, {pipeline_mode = #tpu.pipeline_mode<synchronous>, transform_indices = @transform_13, window_bounds = array<i64: 2, 1, 32>}, {pipeline_mode = #tpu.pipeline_mode<synchronous>, transform_indices = @transform_14, window_bounds = array<i64: 2, 1, 32>}, {pipeline_mode = #tpu.pipeline_mode<synchronous>, transform_indices = @transform_15, window_bounds = array<i64: 2, 1, 32>}, {pipeline_mode = #tpu.pipeline_mode<synchronous>, transform_indices = @transform_16, window_bounds = array<i64: 32, 32>}, {pipeline_mode = #tpu.pipeline_mode<synchronous>, transform_indices = @transform_17, window_bounds = array<i64: 1, 32>}, {pipeline_mode = #tpu.pipeline_mode<synchronous>, transform_indices = @transform_18, window_bounds = array<i64: 32, 128>}, {pipeline_mode = #tpu.pipeline_mode<synchronous>, transform_indices = @transform_19, window_bounds = array<i64: 1, 128>}, {transform_indices = @transform_20, window_bounds = array<i64: 1, 1, 128>}]} {
    %c0 = arith.constant 0 : index
    %c0_0 = arith.constant 0 : index
    %c0_1 = arith.constant 0 : index
    %0 = vector.load %arg1[%c0, %c0_0, %c0_1] : memref<1x8x32xf32, #tpu.memory_space<vmem>>, vector<1x8x32xf32>
    %1 = vector.shape_cast %0 : vector<1x8x32xf32> to vector<8x32xf32>
    %c0_2 = arith.constant 0 : index
    %c0_3 = arith.constant 0 : index
    %c0_4 = arith.constant 0 : index
    %2 = vector.load %arg2[%c0_2, %c0_3, %c0_4] : memref<1x1x8xf32, #tpu.memory_space<vmem>>, vector<1x1x8xf32>
    %3 = vector.shape_cast %2 : vector<1x1x8xf32> to vector<1x8xf32>
    %c0_5 = arith.constant 0 : index
    %c0_6 = arith.constant 0 : index
    %4 = vector.load %arg3[%c0_5, %c0_6] : memref<1x32xf32, #tpu.memory_space<vmem>>, vector<1x32xf32>
    %c0_7 = arith.constant 0 : index
    %c0_8 = arith.constant 0 : index
    %5 = vector.load %arg4[%c0_7, %c0_8] : memref<1x32xf32, #tpu.memory_space<vmem>>, vector<1x32xf32>
    %cst = arith.constant dense<0.000000e+00> : vector<8xf32>
    %6 = vector.multi_reduction <add>, %1, %cst [1] : vector<8x32xf32> to vector<8xf32>
    %7 = vector.shape_cast %6 : vector<8xf32> to vector<8x1xf32>
    %cst_9 = arith.constant 3.200000e+01 : f32
    %8 = vector.broadcast %cst_9 : f32 to vector<8x1xf32>
    %9 = arith.divf %7, %8 : vector<8x1xf32>
    %10 = vector.broadcast %9 : vector<8x1xf32> to vector<8x32xf32>
    %11 = arith.subf %1, %10 : vector<8x32xf32>
    %12 = vector.broadcast %9 : vector<8x1xf32> to vector<8x32xf32>
    %13 = arith.subf %1, %12 : vector<8x32xf32>
    %14 = arith.mulf %11, %13 : vector<8x32xf32>
    %cst_10 = arith.constant dense<0.000000e+00> : vector<8xf32>
    %15 = vector.multi_reduction <add>, %14, %cst_10 [1] : vector<8x32xf32> to vector<8xf32>
    %16 = vector.shape_cast %15 : vector<8xf32> to vector<8x1xf32>
    %cst_11 = arith.constant 3.200000e+01 : f32
    %17 = vector.broadcast %cst_11 : f32 to vector<8x1xf32>
    %18 = arith.divf %16, %17 : vector<8x1xf32>
    %19 = vector.broadcast %9 : vector<8x1xf32> to vector<8x32xf32>
    %20 = arith.subf %1, %19 : vector<8x32xf32>
    %cst_12 = arith.constant 9.99999996E-13 : f32
    %21 = vector.broadcast %cst_12 : f32 to vector<8x1xf32>
    %22 = arith.addf %18, %21 : vector<8x1xf32>
    %23 = math.rsqrt %22 : vector<8x1xf32>
    %24 = vector.broadcast %23 : vector<8x1xf32> to vector<8x32xf32>
    %25 = arith.mulf %20, %24 : vector<8x32xf32>
    %26 = vector.broadcast %4 : vector<1x32xf32> to vector<8x32xf32>
    %27 = arith.mulf %25, %26 : vector<8x32xf32>
    %28 = vector.broadcast %5 : vector<1x32xf32> to vector<8x32xf32>
    %29 = arith.addf %27, %28 : vector<8x32xf32>
    %c0_13 = arith.constant 0 : index
    %c0_14 = arith.constant 0 : index
    %c0_15 = arith.constant 0 : index
    %30 = vector.load %arg5[%c0_13, %c0_14, %c0_15] : memref<2x32x96xf32, #tpu.memory_space<vmem>>, vector<1x32x96xf32>
    %31 = vector.shape_cast %30 : vector<1x32x96xf32> to vector<32x96xf32>
    %cst_16 = arith.constant dense<0.000000e+00> : vector<8x96xf32>
    %32 = tpu.matmul %29, %31, %cst_16 {dimension_numbers = #tpu.dot_dimension_numbers<[1], [0], [0], [1], [0, 0, 1, 1], [], []>} : vector<8x32xf32>, vector<32x96xf32>, vector<8x96xf32> -> vector<8x96xf32>
    %c0_17 = arith.constant 0 : index
    %c0_18 = arith.constant 0 : index
    %c0_19 = arith.constant 0 : index
    %33 = vector.load %arg6[%c0_17, %c0_18, %c0_19] : memref<2x1x96xf32, #tpu.memory_space<vmem>>, vector<1x1x96xf32>
    %34 = vector.shape_cast %33 : vector<1x1x96xf32> to vector<1x96xf32>
    %35 = vector.broadcast %34 : vector<1x96xf32> to vector<8x96xf32>
    %36 = arith.addf %32, %35 : vector<8x96xf32>
    %c0_20 = arith.constant 0 : index
    %c0_21 = arith.constant 0 : index
    %c0_22 = arith.constant 0 : index
    %37 = vector.load %arg7[%c0_20, %c0_21, %c0_22] : memref<2x32x32xf32, #tpu.memory_space<vmem>>, vector<1x32x32xf32>
    %38 = vector.shape_cast %37 : vector<1x32x32xf32> to vector<32x32xf32>
    %cst_23 = arith.constant 0.000000e+00 : f32
    %39 = vector.broadcast %cst_23 : f32 to vector<8x32xf32>
    %40 = vector.extract_strided_slice %36 {offsets = [0, 0], sizes = [8, 16], strides = [1, 1]} : vector<8x96xf32> to vector<8x16xf32>
    %cst_24 = arith.constant 2.500000e-01 : f32
    %41 = vector.broadcast %cst_24 : f32 to vector<8x16xf32>
    %42 = arith.mulf %40, %41 : vector<8x16xf32>
    %43 = vector.extract_strided_slice %36 {offsets = [0, 32], sizes = [8, 16], strides = [1, 1]} : vector<8x96xf32> to vector<8x16xf32>
    %44 = vector.extract_strided_slice %36 {offsets = [0, 64], sizes = [8, 16], strides = [1, 1]} : vector<8x96xf32> to vector<8x16xf32>
    %cst_25 = arith.constant dense<0.000000e+00> : vector<8x8xf32>
    %45 = tpu.matmul %42, %43, %cst_25 {dimension_numbers = #tpu.dot_dimension_numbers<[1], [1], [0], [0], [0, 0, 1, 0], [], []>} : vector<8x16xf32>, vector<8x16xf32>, vector<8x8xf32> -> vector<8x8xf32>
    %46 = vector.broadcast %3 : vector<1x8xf32> to vector<8x8xf32>
    %47 = arith.addf %45, %46 : vector<8x8xf32>
    %cst_26 = arith.constant dense<0xFF800000> : vector<8xf32>
    %48 = vector.multi_reduction <maximumf>, %47, %cst_26 [1] : vector<8x8xf32> to vector<8xf32>
    %49 = vector.shape_cast %48 : vector<8xf32> to vector<8x1xf32>
    %50 = vector.broadcast %49 : vector<8x1xf32> to vector<8x8xf32>
    %51 = arith.subf %47, %50 : vector<8x8xf32>
    %52 = math.exp %51 : vector<8x8xf32>
    %cst_27 = arith.constant dense<0.000000e+00> : vector<8xf32>
    %53 = vector.multi_reduction <add>, %52, %cst_27 [1] : vector<8x8xf32> to vector<8xf32>
    %54 = vector.shape_cast %53 : vector<8xf32> to vector<8x1xf32>
    %55 = vector.broadcast %54 : vector<8x1xf32> to vector<8x8xf32>
    %56 = arith.divf %52, %55 : vector<8x8xf32>
    %cst_28 = arith.constant dense<0.000000e+00> : vector<8x16xf32>
    %57 = tpu.matmul %56, %44, %cst_28 {dimension_numbers = #tpu.dot_dimension_numbers<[1], [0], [0], [1], [0, 0, 1, 1], [], []>} : vector<8x8xf32>, vector<8x16xf32>, vector<8x16xf32> -> vector<8x16xf32>
    %58 = vector.extract_strided_slice %38 {offsets = [0, 0], sizes = [16, 32], strides = [1, 1]} : vector<32x32xf32> to vector<16x32xf32>
    %cst_29 = arith.constant dense<0.000000e+00> : vector<8x32xf32>
    %59 = tpu.matmul %57, %58, %cst_29 {dimension_numbers = #tpu.dot_dimension_numbers<[1], [0], [0], [1], [0, 0, 1, 1], [], []>} : vector<8x16xf32>, vector<16x32xf32>, vector<8x32xf32> -> vector<8x32xf32>
    %60 = arith.addf %39, %59 : vector<8x32xf32>
    %61 = vector.extract_strided_slice %36 {offsets = [0, 16], sizes = [8, 16], strides = [1, 1]} : vector<8x96xf32> to vector<8x16xf32>
    %cst_30 = arith.constant 2.500000e-01 : f32
    %62 = vector.broadcast %cst_30 : f32 to vector<8x16xf32>
    %63 = arith.mulf %61, %62 : vector<8x16xf32>
    %64 = vector.extract_strided_slice %36 {offsets = [0, 48], sizes = [8, 16], strides = [1, 1]} : vector<8x96xf32> to vector<8x16xf32>
    %65 = vector.extract_strided_slice %36 {offsets = [0, 80], sizes = [8, 16], strides = [1, 1]} : vector<8x96xf32> to vector<8x16xf32>
    %cst_31 = arith.constant dense<0.000000e+00> : vector<8x8xf32>
    %66 = tpu.matmul %63, %64, %cst_31 {dimension_numbers = #tpu.dot_dimension_numbers<[1], [1], [0], [0], [0, 0, 1, 0], [], []>} : vector<8x16xf32>, vector<8x16xf32>, vector<8x8xf32> -> vector<8x8xf32>
    %67 = vector.broadcast %3 : vector<1x8xf32> to vector<8x8xf32>
    %68 = arith.addf %66, %67 : vector<8x8xf32>
    %cst_32 = arith.constant dense<0xFF800000> : vector<8xf32>
    %69 = vector.multi_reduction <maximumf>, %68, %cst_32 [1] : vector<8x8xf32> to vector<8xf32>
    %70 = vector.shape_cast %69 : vector<8xf32> to vector<8x1xf32>
    %71 = vector.broadcast %70 : vector<8x1xf32> to vector<8x8xf32>
    %72 = arith.subf %68, %71 : vector<8x8xf32>
    %73 = math.exp %72 : vector<8x8xf32>
    %cst_33 = arith.constant dense<0.000000e+00> : vector<8xf32>
    %74 = vector.multi_reduction <add>, %73, %cst_33 [1] : vector<8x8xf32> to vector<8xf32>
    %75 = vector.shape_cast %74 : vector<8xf32> to vector<8x1xf32>
    %76 = vector.broadcast %75 : vector<8x1xf32> to vector<8x8xf32>
    %77 = arith.divf %73, %76 : vector<8x8xf32>
    %cst_34 = arith.constant dense<0.000000e+00> : vector<8x16xf32>
    %78 = tpu.matmul %77, %65, %cst_34 {dimension_numbers = #tpu.dot_dimension_numbers<[1], [0], [0], [1], [0, 0, 1, 1], [], []>} : vector<8x8xf32>, vector<8x16xf32>, vector<8x16xf32> -> vector<8x16xf32>
    %79 = vector.extract_strided_slice %38 {offsets = [16, 0], sizes = [16, 32], strides = [1, 1]} : vector<32x32xf32> to vector<16x32xf32>
    %cst_35 = arith.constant dense<0.000000e+00> : vector<8x32xf32>
    %80 = tpu.matmul %78, %79, %cst_35 {dimension_numbers = #tpu.dot_dimension_numbers<[1], [0], [0], [1], [0, 0, 1, 1], [], []>} : vector<8x16xf32>, vector<16x32xf32>, vector<8x32xf32> -> vector<8x32xf32>
    %81 = arith.addf %60, %80 : vector<8x32xf32>
    %c0_36 = arith.constant 0 : index
    %c0_37 = arith.constant 0 : index
    %c0_38 = arith.constant 0 : index
    %82 = vector.load %arg8[%c0_36, %c0_37, %c0_38] : memref<2x1x32xf32, #tpu.memory_space<vmem>>, vector<1x1x32xf32>
    %83 = vector.shape_cast %82 : vector<1x1x32xf32> to vector<1x32xf32>
    %84 = vector.broadcast %83 : vector<1x32xf32> to vector<8x32xf32>
    %85 = arith.addf %81, %84 : vector<8x32xf32>
    %86 = arith.addf %29, %85 : vector<8x32xf32>
    %c0_39 = arith.constant 0 : index
    %c0_40 = arith.constant 0 : index
    %c0_41 = arith.constant 0 : index
    %87 = vector.load %arg9[%c0_39, %c0_40, %c0_41] : memref<2x1x32xf32, #tpu.memory_space<vmem>>, vector<1x1x32xf32>
    %88 = vector.shape_cast %87 : vector<1x1x32xf32> to vector<1x32xf32>
    %c0_42 = arith.constant 0 : index
    %c0_43 = arith.constant 0 : index
    %c0_44 = arith.constant 0 : index
    %89 = vector.load %arg10[%c0_42, %c0_43, %c0_44] : memref<2x1x32xf32, #tpu.memory_space<vmem>>, vector<1x1x32xf32>
    %90 = vector.shape_cast %89 : vector<1x1x32xf32> to vector<1x32xf32>
    %cst_45 = arith.constant dense<0.000000e+00> : vector<8xf32>
    %91 = vector.multi_reduction <add>, %86, %cst_45 [1] : vector<8x32xf32> to vector<8xf32>
    %92 = vector.shape_cast %91 : vector<8xf32> to vector<8x1xf32>
    %cst_46 = arith.constant 3.200000e+01 : f32
    %93 = vector.broadcast %cst_46 : f32 to vector<8x1xf32>
    %94 = arith.divf %92, %93 : vector<8x1xf32>
    %95 = vector.broadcast %94 : vector<8x1xf32> to vector<8x32xf32>
    %96 = arith.subf %86, %95 : vector<8x32xf32>
    %97 = vector.broadcast %94 : vector<8x1xf32> to vector<8x32xf32>
    %98 = arith.subf %86, %97 : vector<8x32xf32>
    %99 = arith.mulf %96, %98 : vector<8x32xf32>
    %cst_47 = arith.constant dense<0.000000e+00> : vector<8xf32>
    %100 = vector.multi_reduction <add>, %99, %cst_47 [1] : vector<8x32xf32> to vector<8xf32>
    %101 = vector.shape_cast %100 : vector<8xf32> to vector<8x1xf32>
    %cst_48 = arith.constant 3.200000e+01 : f32
    %102 = vector.broadcast %cst_48 : f32 to vector<8x1xf32>
    %103 = arith.divf %101, %102 : vector<8x1xf32>
    %104 = vector.broadcast %94 : vector<8x1xf32> to vector<8x32xf32>
    %105 = arith.subf %86, %104 : vector<8x32xf32>
    %cst_49 = arith.constant 9.99999996E-13 : f32
    %106 = vector.broadcast %cst_49 : f32 to vector<8x1xf32>
    %107 = arith.addf %103, %106 : vector<8x1xf32>
    %108 = math.rsqrt %107 : vector<8x1xf32>
    %109 = vector.broadcast %108 : vector<8x1xf32> to vector<8x32xf32>
    %110 = arith.mulf %105, %109 : vector<8x32xf32>
    %111 = vector.broadcast %88 : vector<1x32xf32> to vector<8x32xf32>
    %112 = arith.mulf %110, %111 : vector<8x32xf32>
    %113 = vector.broadcast %90 : vector<1x32xf32> to vector<8x32xf32>
    %114 = arith.addf %112, %113 : vector<8x32xf32>
    %c0_50 = arith.constant 0 : index
    %c0_51 = arith.constant 0 : index
    %c0_52 = arith.constant 0 : index
    %115 = vector.load %arg11[%c0_50, %c0_51, %c0_52] : memref<2x32x64xf32, #tpu.memory_space<vmem>>, vector<1x32x64xf32>
    %116 = vector.shape_cast %115 : vector<1x32x64xf32> to vector<32x64xf32>
    %cst_53 = arith.constant dense<0.000000e+00> : vector<8x64xf32>
    %117 = tpu.matmul %114, %116, %cst_53 {dimension_numbers = #tpu.dot_dimension_numbers<[1], [0], [0], [1], [0, 0, 1, 1], [], []>} : vector<8x32xf32>, vector<32x64xf32>, vector<8x64xf32> -> vector<8x64xf32>
    %c0_54 = arith.constant 0 : index
    %c0_55 = arith.constant 0 : index
    %c0_56 = arith.constant 0 : index
    %118 = vector.load %arg12[%c0_54, %c0_55, %c0_56] : memref<2x1x64xf32, #tpu.memory_space<vmem>>, vector<1x1x64xf32>
    %119 = vector.shape_cast %118 : vector<1x1x64xf32> to vector<1x64xf32>
    %120 = vector.broadcast %119 : vector<1x64xf32> to vector<8x64xf32>
    %121 = arith.addf %117, %120 : vector<8x64xf32>
    %cst_57 = arith.constant 5.000000e-01 : f32
    %122 = vector.broadcast %cst_57 : f32 to vector<8x64xf32>
    %123 = arith.mulf %122, %121 : vector<8x64xf32>
    %cst_58 = arith.constant 4.471500e-02 : f32
    %124 = vector.broadcast %cst_58 : f32 to vector<8x64xf32>
    %125 = arith.mulf %124, %121 : vector<8x64xf32>
    %126 = arith.mulf %125, %121 : vector<8x64xf32>
    %127 = arith.mulf %126, %121 : vector<8x64xf32>
    %128 = arith.addf %121, %127 : vector<8x64xf32>
    %cst_59 = arith.constant 0.797884583 : f32
    %129 = vector.broadcast %cst_59 : f32 to vector<8x64xf32>
    %130 = arith.mulf %129, %128 : vector<8x64xf32>
    %131 = math.tanh %130 : vector<8x64xf32>
    %cst_60 = arith.constant 1.000000e+00 : f32
    %132 = vector.broadcast %cst_60 : f32 to vector<8x64xf32>
    %133 = arith.addf %132, %131 : vector<8x64xf32>
    %134 = arith.mulf %123, %133 : vector<8x64xf32>
    %c0_61 = arith.constant 0 : index
    %c0_62 = arith.constant 0 : index
    %c0_63 = arith.constant 0 : index
    %135 = vector.load %arg13[%c0_61, %c0_62, %c0_63] : memref<2x64x32xf32, #tpu.memory_space<vmem>>, vector<1x64x32xf32>
    %136 = vector.shape_cast %135 : vector<1x64x32xf32> to vector<64x32xf32>
    %cst_64 = arith.constant dense<0.000000e+00> : vector<8x32xf32>
    %137 = tpu.matmul %134, %136, %cst_64 {dimension_numbers = #tpu.dot_dimension_numbers<[1], [0], [0], [1], [0, 0, 1, 1], [], []>} : vector<8x64xf32>, vector<64x32xf32>, vector<8x32xf32> -> vector<8x32xf32>
    %c0_65 = arith.constant 0 : index
    %c0_66 = arith.constant 0 : index
    %c0_67 = arith.constant 0 : index
    %138 = vector.load %arg14[%c0_65, %c0_66, %c0_67] : memref<2x1x32xf32, #tpu.memory_space<vmem>>, vector<1x1x32xf32>
    %139 = vector.shape_cast %138 : vector<1x1x32xf32> to vector<1x32xf32>
    %140 = vector.broadcast %139 : vector<1x32xf32> to vector<8x32xf32>
    %141 = arith.addf %137, %140 : vector<8x32xf32>
    %142 = arith.addf %114, %141 : vector<8x32xf32>
    %c0_68 = arith.constant 0 : index
    %c0_69 = arith.constant 0 : index
    %c0_70 = arith.constant 0 : index
    %143 = vector.load %arg15[%c0_68, %c0_69, %c0_70] : memref<2x1x32xf32, #tpu.memory_space<vmem>>, vector<1x1x32xf32>
    %144 = vector.shape_cast %143 : vector<1x1x32xf32> to vector<1x32xf32>
    %c0_71 = arith.constant 0 : index
    %c0_72 = arith.constant 0 : index
    %c0_73 = arith.constant 0 : index
    %145 = vector.load %arg16[%c0_71, %c0_72, %c0_73] : memref<2x1x32xf32, #tpu.memory_space<vmem>>, vector<1x1x32xf32>
    %146 = vector.shape_cast %145 : vector<1x1x32xf32> to vector<1x32xf32>
    %cst_74 = arith.constant dense<0.000000e+00> : vector<8xf32>
    %147 = vector.multi_reduction <add>, %142, %cst_74 [1] : vector<8x32xf32> to vector<8xf32>
    %148 = vector.shape_cast %147 : vector<8xf32> to vector<8x1xf32>
    %cst_75 = arith.constant 3.200000e+01 : f32
    %149 = vector.broadcast %cst_75 : f32 to vector<8x1xf32>
    %150 = arith.divf %148, %149 : vector<8x1xf32>
    %151 = vector.broadcast %150 : vector<8x1xf32> to vector<8x32xf32>
    %152 = arith.subf %142, %151 : vector<8x32xf32>
    %153 = vector.broadcast %150 : vector<8x1xf32> to vector<8x32xf32>
    %154 = arith.subf %142, %153 : vector<8x32xf32>
    %155 = arith.mulf %152, %154 : vector<8x32xf32>
    %cst_76 = arith.constant dense<0.000000e+00> : vector<8xf32>
    %156 = vector.multi_reduction <add>, %155, %cst_76 [1] : vector<8x32xf32> to vector<8xf32>
    %157 = vector.shape_cast %156 : vector<8xf32> to vector<8x1xf32>
    %cst_77 = arith.constant 3.200000e+01 : f32
    %158 = vector.broadcast %cst_77 : f32 to vector<8x1xf32>
    %159 = arith.divf %157, %158 : vector<8x1xf32>
    %160 = vector.broadcast %150 : vector<8x1xf32> to vector<8x32xf32>
    %161 = arith.subf %142, %160 : vector<8x32xf32>
    %cst_78 = arith.constant 9.99999996E-13 : f32
    %162 = vector.broadcast %cst_78 : f32 to vector<8x1xf32>
    %163 = arith.addf %159, %162 : vector<8x1xf32>
    %164 = math.rsqrt %163 : vector<8x1xf32>
    %165 = vector.broadcast %164 : vector<8x1xf32> to vector<8x32xf32>
    %166 = arith.mulf %161, %165 : vector<8x32xf32>
    %167 = vector.broadcast %144 : vector<1x32xf32> to vector<8x32xf32>
    %168 = arith.mulf %166, %167 : vector<8x32xf32>
    %169 = vector.broadcast %146 : vector<1x32xf32> to vector<8x32xf32>
    %170 = arith.addf %168, %169 : vector<8x32xf32>
    %c1 = arith.constant 1 : index
    %c0_79 = arith.constant 0 : index
    %c0_80 = arith.constant 0 : index
    %171 = vector.load %arg5[%c1, %c0_79, %c0_80] : memref<2x32x96xf32, #tpu.memory_space<vmem>>, vector<1x32x96xf32>
    %172 = vector.shape_cast %171 : vector<1x32x96xf32> to vector<32x96xf32>
    %cst_81 = arith.constant dense<0.000000e+00> : vector<8x96xf32>
    %173 = tpu.matmul %170, %172, %cst_81 {dimension_numbers = #tpu.dot_dimension_numbers<[1], [0], [0], [1], [0, 0, 1, 1], [], []>} : vector<8x32xf32>, vector<32x96xf32>, vector<8x96xf32> -> vector<8x96xf32>
    %c1_82 = arith.constant 1 : index
    %c0_83 = arith.constant 0 : index
    %c0_84 = arith.constant 0 : index
    %174 = vector.load %arg6[%c1_82, %c0_83, %c0_84] : memref<2x1x96xf32, #tpu.memory_space<vmem>>, vector<1x1x96xf32>
    %175 = vector.shape_cast %174 : vector<1x1x96xf32> to vector<1x96xf32>
    %176 = vector.broadcast %175 : vector<1x96xf32> to vector<8x96xf32>
    %177 = arith.addf %173, %176 : vector<8x96xf32>
    %c1_85 = arith.constant 1 : index
    %c0_86 = arith.constant 0 : index
    %c0_87 = arith.constant 0 : index
    %178 = vector.load %arg7[%c1_85, %c0_86, %c0_87] : memref<2x32x32xf32, #tpu.memory_space<vmem>>, vector<1x32x32xf32>
    %179 = vector.shape_cast %178 : vector<1x32x32xf32> to vector<32x32xf32>
    %cst_88 = arith.constant 0.000000e+00 : f32
    %180 = vector.broadcast %cst_88 : f32 to vector<8x32xf32>
    %181 = vector.extract_strided_slice %177 {offsets = [0, 0], sizes = [8, 16], strides = [1, 1]} : vector<8x96xf32> to vector<8x16xf32>
    %cst_89 = arith.constant 2.500000e-01 : f32
    %182 = vector.broadcast %cst_89 : f32 to vector<8x16xf32>
    %183 = arith.mulf %181, %182 : vector<8x16xf32>
    %184 = vector.extract_strided_slice %177 {offsets = [0, 32], sizes = [8, 16], strides = [1, 1]} : vector<8x96xf32> to vector<8x16xf32>
    %185 = vector.extract_strided_slice %177 {offsets = [0, 64], sizes = [8, 16], strides = [1, 1]} : vector<8x96xf32> to vector<8x16xf32>
    %cst_90 = arith.constant dense<0.000000e+00> : vector<8x8xf32>
    %186 = tpu.matmul %183, %184, %cst_90 {dimension_numbers = #tpu.dot_dimension_numbers<[1], [1], [0], [0], [0, 0, 1, 0], [], []>} : vector<8x16xf32>, vector<8x16xf32>, vector<8x8xf32> -> vector<8x8xf32>
    %187 = vector.broadcast %3 : vector<1x8xf32> to vector<8x8xf32>
    %188 = arith.addf %186, %187 : vector<8x8xf32>
    %cst_91 = arith.constant dense<0xFF800000> : vector<8xf32>
    %189 = vector.multi_reduction <maximumf>, %188, %cst_91 [1] : vector<8x8xf32> to vector<8xf32>
    %190 = vector.shape_cast %189 : vector<8xf32> to vector<8x1xf32>
    %191 = vector.broadcast %190 : vector<8x1xf32> to vector<8x8xf32>
    %192 = arith.subf %188, %191 : vector<8x8xf32>
    %193 = math.exp %192 : vector<8x8xf32>
    %cst_92 = arith.constant dense<0.000000e+00> : vector<8xf32>
    %194 = vector.multi_reduction <add>, %193, %cst_92 [1] : vector<8x8xf32> to vector<8xf32>
    %195 = vector.shape_cast %194 : vector<8xf32> to vector<8x1xf32>
    %196 = vector.broadcast %195 : vector<8x1xf32> to vector<8x8xf32>
    %197 = arith.divf %193, %196 : vector<8x8xf32>
    %cst_93 = arith.constant dense<0.000000e+00> : vector<8x16xf32>
    %198 = tpu.matmul %197, %185, %cst_93 {dimension_numbers = #tpu.dot_dimension_numbers<[1], [0], [0], [1], [0, 0, 1, 1], [], []>} : vector<8x8xf32>, vector<8x16xf32>, vector<8x16xf32> -> vector<8x16xf32>
    %199 = vector.extract_strided_slice %179 {offsets = [0, 0], sizes = [16, 32], strides = [1, 1]} : vector<32x32xf32> to vector<16x32xf32>
    %cst_94 = arith.constant dense<0.000000e+00> : vector<8x32xf32>
    %200 = tpu.matmul %198, %199, %cst_94 {dimension_numbers = #tpu.dot_dimension_numbers<[1], [0], [0], [1], [0, 0, 1, 1], [], []>} : vector<8x16xf32>, vector<16x32xf32>, vector<8x32xf32> -> vector<8x32xf32>
    %201 = arith.addf %180, %200 : vector<8x32xf32>
    %202 = vector.extract_strided_slice %177 {offsets = [0, 16], sizes = [8, 16], strides = [1, 1]} : vector<8x96xf32> to vector<8x16xf32>
    %cst_95 = arith.constant 2.500000e-01 : f32
    %203 = vector.broadcast %cst_95 : f32 to vector<8x16xf32>
    %204 = arith.mulf %202, %203 : vector<8x16xf32>
    %205 = vector.extract_strided_slice %177 {offsets = [0, 48], sizes = [8, 16], strides = [1, 1]} : vector<8x96xf32> to vector<8x16xf32>
    %206 = vector.extract_strided_slice %177 {offsets = [0, 80], sizes = [8, 16], strides = [1, 1]} : vector<8x96xf32> to vector<8x16xf32>
    %cst_96 = arith.constant dense<0.000000e+00> : vector<8x8xf32>
    %207 = tpu.matmul %204, %205, %cst_96 {dimension_numbers = #tpu.dot_dimension_numbers<[1], [1], [0], [0], [0, 0, 1, 0], [], []>} : vector<8x16xf32>, vector<8x16xf32>, vector<8x8xf32> -> vector<8x8xf32>
    %208 = vector.broadcast %3 : vector<1x8xf32> to vector<8x8xf32>
    %209 = arith.addf %207, %208 : vector<8x8xf32>
    %cst_97 = arith.constant dense<0xFF800000> : vector<8xf32>
    %210 = vector.multi_reduction <maximumf>, %209, %cst_97 [1] : vector<8x8xf32> to vector<8xf32>
    %211 = vector.shape_cast %210 : vector<8xf32> to vector<8x1xf32>
    %212 = vector.broadcast %211 : vector<8x1xf32> to vector<8x8xf32>
    %213 = arith.subf %209, %212 : vector<8x8xf32>
    %214 = math.exp %213 : vector<8x8xf32>
    %cst_98 = arith.constant dense<0.000000e+00> : vector<8xf32>
    %215 = vector.multi_reduction <add>, %214, %cst_98 [1] : vector<8x8xf32> to vector<8xf32>
    %216 = vector.shape_cast %215 : vector<8xf32> to vector<8x1xf32>
    %217 = vector.broadcast %216 : vector<8x1xf32> to vector<8x8xf32>
    %218 = arith.divf %214, %217 : vector<8x8xf32>
    %cst_99 = arith.constant dense<0.000000e+00> : vector<8x16xf32>
    %219 = tpu.matmul %218, %206, %cst_99 {dimension_numbers = #tpu.dot_dimension_numbers<[1], [0], [0], [1], [0, 0, 1, 1], [], []>} : vector<8x8xf32>, vector<8x16xf32>, vector<8x16xf32> -> vector<8x16xf32>
    %220 = vector.extract_strided_slice %179 {offsets = [16, 0], sizes = [16, 32], strides = [1, 1]} : vector<32x32xf32> to vector<16x32xf32>
    %cst_100 = arith.constant dense<0.000000e+00> : vector<8x32xf32>
    %221 = tpu.matmul %219, %220, %cst_100 {dimension_numbers = #tpu.dot_dimension_numbers<[1], [0], [0], [1], [0, 0, 1, 1], [], []>} : vector<8x16xf32>, vector<16x32xf32>, vector<8x32xf32> -> vector<8x32xf32>
    %222 = arith.addf %201, %221 : vector<8x32xf32>
    %c1_101 = arith.constant 1 : index
    %c0_102 = arith.constant 0 : index
    %c0_103 = arith.constant 0 : index
    %223 = vector.load %arg8[%c1_101, %c0_102, %c0_103] : memref<2x1x32xf32, #tpu.memory_space<vmem>>, vector<1x1x32xf32>
    %224 = vector.shape_cast %223 : vector<1x1x32xf32> to vector<1x32xf32>
    %225 = vector.broadcast %224 : vector<1x32xf32> to vector<8x32xf32>
    %226 = arith.addf %222, %225 : vector<8x32xf32>
    %227 = arith.addf %170, %226 : vector<8x32xf32>
    %c1_104 = arith.constant 1 : index
    %c0_105 = arith.constant 0 : index
    %c0_106 = arith.constant 0 : index
    %228 = vector.load %arg9[%c1_104, %c0_105, %c0_106] : memref<2x1x32xf32, #tpu.memory_space<vmem>>, vector<1x1x32xf32>
    %229 = vector.shape_cast %228 : vector<1x1x32xf32> to vector<1x32xf32>
    %c1_107 = arith.constant 1 : index
    %c0_108 = arith.constant 0 : index
    %c0_109 = arith.constant 0 : index
    %230 = vector.load %arg10[%c1_107, %c0_108, %c0_109] : memref<2x1x32xf32, #tpu.memory_space<vmem>>, vector<1x1x32xf32>
    %231 = vector.shape_cast %230 : vector<1x1x32xf32> to vector<1x32xf32>
    %cst_110 = arith.constant dense<0.000000e+00> : vector<8xf32>
    %232 = vector.multi_reduction <add>, %227, %cst_110 [1] : vector<8x32xf32> to vector<8xf32>
    %233 = vector.shape_cast %232 : vector<8xf32> to vector<8x1xf32>
    %cst_111 = arith.constant 3.200000e+01 : f32
    %234 = vector.broadcast %cst_111 : f32 to vector<8x1xf32>
    %235 = arith.divf %233, %234 : vector<8x1xf32>
    %236 = vector.broadcast %235 : vector<8x1xf32> to vector<8x32xf32>
    %237 = arith.subf %227, %236 : vector<8x32xf32>
    %238 = vector.broadcast %235 : vector<8x1xf32> to vector<8x32xf32>
    %239 = arith.subf %227, %238 : vector<8x32xf32>
    %240 = arith.mulf %237, %239 : vector<8x32xf32>
    %cst_112 = arith.constant dense<0.000000e+00> : vector<8xf32>
    %241 = vector.multi_reduction <add>, %240, %cst_112 [1] : vector<8x32xf32> to vector<8xf32>
    %242 = vector.shape_cast %241 : vector<8xf32> to vector<8x1xf32>
    %cst_113 = arith.constant 3.200000e+01 : f32
    %243 = vector.broadcast %cst_113 : f32 to vector<8x1xf32>
    %244 = arith.divf %242, %243 : vector<8x1xf32>
    %245 = vector.broadcast %235 : vector<8x1xf32> to vector<8x32xf32>
    %246 = arith.subf %227, %245 : vector<8x32xf32>
    %cst_114 = arith.constant 9.99999996E-13 : f32
    %247 = vector.broadcast %cst_114 : f32 to vector<8x1xf32>
    %248 = arith.addf %244, %247 : vector<8x1xf32>
    %249 = math.rsqrt %248 : vector<8x1xf32>
    %250 = vector.broadcast %249 : vector<8x1xf32> to vector<8x32xf32>
    %251 = arith.mulf %246, %250 : vector<8x32xf32>
    %252 = vector.broadcast %229 : vector<1x32xf32> to vector<8x32xf32>
    %253 = arith.mulf %251, %252 : vector<8x32xf32>
    %254 = vector.broadcast %231 : vector<1x32xf32> to vector<8x32xf32>
    %255 = arith.addf %253, %254 : vector<8x32xf32>
    %c1_115 = arith.constant 1 : index
    %c0_116 = arith.constant 0 : index
    %c0_117 = arith.constant 0 : index
    %256 = vector.load %arg11[%c1_115, %c0_116, %c0_117] : memref<2x32x64xf32, #tpu.memory_space<vmem>>, vector<1x32x64xf32>
    %257 = vector.shape_cast %256 : vector<1x32x64xf32> to vector<32x64xf32>
    %cst_118 = arith.constant dense<0.000000e+00> : vector<8x64xf32>
    %258 = tpu.matmul %255, %257, %cst_118 {dimension_numbers = #tpu.dot_dimension_numbers<[1], [0], [0], [1], [0, 0, 1, 1], [], []>} : vector<8x32xf32>, vector<32x64xf32>, vector<8x64xf32> -> vector<8x64xf32>
    %c1_119 = arith.constant 1 : index
    %c0_120 = arith.constant 0 : index
    %c0_121 = arith.constant 0 : index
    %259 = vector.load %arg12[%c1_119, %c0_120, %c0_121] : memref<2x1x64xf32, #tpu.memory_space<vmem>>, vector<1x1x64xf32>
    %260 = vector.shape_cast %259 : vector<1x1x64xf32> to vector<1x64xf32>
    %261 = vector.broadcast %260 : vector<1x64xf32> to vector<8x64xf32>
    %262 = arith.addf %258, %261 : vector<8x64xf32>
    %cst_122 = arith.constant 5.000000e-01 : f32
    %263 = vector.broadcast %cst_122 : f32 to vector<8x64xf32>
    %264 = arith.mulf %263, %262 : vector<8x64xf32>
    %cst_123 = arith.constant 4.471500e-02 : f32
    %265 = vector.broadcast %cst_123 : f32 to vector<8x64xf32>
    %266 = arith.mulf %265, %262 : vector<8x64xf32>
    %267 = arith.mulf %266, %262 : vector<8x64xf32>
    %268 = arith.mulf %267, %262 : vector<8x64xf32>
    %269 = arith.addf %262, %268 : vector<8x64xf32>
    %cst_124 = arith.constant 0.797884583 : f32
    %270 = vector.broadcast %cst_124 : f32 to vector<8x64xf32>
    %271 = arith.mulf %270, %269 : vector<8x64xf32>
    %272 = math.tanh %271 : vector<8x64xf32>
    %cst_125 = arith.constant 1.000000e+00 : f32
    %273 = vector.broadcast %cst_125 : f32 to vector<8x64xf32>
    %274 = arith.addf %273, %272 : vector<8x64xf32>
    %275 = arith.mulf %264, %274 : vector<8x64xf32>
    %c1_126 = arith.constant 1 : index
    %c0_127 = arith.constant 0 : index
    %c0_128 = arith.constant 0 : index
    %276 = vector.load %arg13[%c1_126, %c0_127, %c0_128] : memref<2x64x32xf32, #tpu.memory_space<vmem>>, vector<1x64x32xf32>
    %277 = vector.shape_cast %276 : vector<1x64x32xf32> to vector<64x32xf32>
    %cst_129 = arith.constant dense<0.000000e+00> : vector<8x32xf32>
    %278 = tpu.matmul %275, %277, %cst_129 {dimension_numbers = #tpu.dot_dimension_numbers<[1], [0], [0], [1], [0, 0, 1, 1], [], []>} : vector<8x64xf32>, vector<64x32xf32>, vector<8x32xf32> -> vector<8x32xf32>
    %c1_130 = arith.constant 1 : index
    %c0_131 = arith.constant 0 : index
    %c0_132 = arith.constant 0 : index
    %279 = vector.load %arg14[%c1_130, %c0_131, %c0_132] : memref<2x1x32xf32, #tpu.memory_space<vmem>>, vector<1x1x32xf32>
    %280 = vector.shape_cast %279 : vector<1x1x32xf32> to vector<1x32xf32>
    %281 = vector.broadcast %280 : vector<1x32xf32> to vector<8x32xf32>
    %282 = arith.addf %278, %281 : vector<8x32xf32>
    %283 = arith.addf %255, %282 : vector<8x32xf32>
    %c1_133 = arith.constant 1 : index
    %c0_134 = arith.constant 0 : index
    %c0_135 = arith.constant 0 : index
    %284 = vector.load %arg15[%c1_133, %c0_134, %c0_135] : memref<2x1x32xf32, #tpu.memory_space<vmem>>, vector<1x1x32xf32>
    %285 = vector.shape_cast %284 : vector<1x1x32xf32> to vector<1x32xf32>
    %c1_136 = arith.constant 1 : index
    %c0_137 = arith.constant 0 : index
    %c0_138 = arith.constant 0 : index
    %286 = vector.load %arg16[%c1_136, %c0_137, %c0_138] : memref<2x1x32xf32, #tpu.memory_space<vmem>>, vector<1x1x32xf32>
    %287 = vector.shape_cast %286 : vector<1x1x32xf32> to vector<1x32xf32>
    %cst_139 = arith.constant dense<0.000000e+00> : vector<8xf32>
    %288 = vector.multi_reduction <add>, %283, %cst_139 [1] : vector<8x32xf32> to vector<8xf32>
    %289 = vector.shape_cast %288 : vector<8xf32> to vector<8x1xf32>
    %cst_140 = arith.constant 3.200000e+01 : f32
    %290 = vector.broadcast %cst_140 : f32 to vector<8x1xf32>
    %291 = arith.divf %289, %290 : vector<8x1xf32>
    %292 = vector.broadcast %291 : vector<8x1xf32> to vector<8x32xf32>
    %293 = arith.subf %283, %292 : vector<8x32xf32>
    %294 = vector.broadcast %291 : vector<8x1xf32> to vector<8x32xf32>
    %295 = arith.subf %283, %294 : vector<8x32xf32>
    %296 = arith.mulf %293, %295 : vector<8x32xf32>
    %cst_141 = arith.constant dense<0.000000e+00> : vector<8xf32>
    %297 = vector.multi_reduction <add>, %296, %cst_141 [1] : vector<8x32xf32> to vector<8xf32>
    %298 = vector.shape_cast %297 : vector<8xf32> to vector<8x1xf32>
    %cst_142 = arith.constant 3.200000e+01 : f32
    %299 = vector.broadcast %cst_142 : f32 to vector<8x1xf32>
    %300 = arith.divf %298, %299 : vector<8x1xf32>
    %301 = vector.broadcast %291 : vector<8x1xf32> to vector<8x32xf32>
    %302 = arith.subf %283, %301 : vector<8x32xf32>
    %cst_143 = arith.constant 9.99999996E-13 : f32
    %303 = vector.broadcast %cst_143 : f32 to vector<8x1xf32>
    %304 = arith.addf %300, %303 : vector<8x1xf32>
    %305 = math.rsqrt %304 : vector<8x1xf32>
    %306 = vector.broadcast %305 : vector<8x1xf32> to vector<8x32xf32>
    %307 = arith.mulf %302, %306 : vector<8x32xf32>
    %308 = vector.broadcast %285 : vector<1x32xf32> to vector<8x32xf32>
    %309 = arith.mulf %307, %308 : vector<8x32xf32>
    %310 = vector.broadcast %287 : vector<1x32xf32> to vector<8x32xf32>
    %311 = arith.addf %309, %310 : vector<8x32xf32>
    %312 = vector.extract_strided_slice %311 {offsets = [0, 0], sizes = [1, 32], strides = [1, 1]} : vector<8x32xf32> to vector<1x32xf32>
    %c0_144 = arith.constant 0 : index
    %c0_145 = arith.constant 0 : index
    %313 = vector.load %arg17[%c0_144, %c0_145] : memref<32x32xf32, #tpu.memory_space<vmem>>, vector<32x32xf32>
    %cst_146 = arith.constant dense<0.000000e+00> : vector<1x32xf32>
    %314 = tpu.matmul %312, %313, %cst_146 {dimension_numbers = #tpu.dot_dimension_numbers<[1], [0], [0], [1], [0, 0, 1, 1], [], []>} : vector<1x32xf32>, vector<32x32xf32>, vector<1x32xf32> -> vector<1x32xf32>
    %c0_147 = arith.constant 0 : index
    %c0_148 = arith.constant 0 : index
    %315 = vector.load %arg18[%c0_147, %c0_148] : memref<1x32xf32, #tpu.memory_space<vmem>>, vector<1x32xf32>
    %316 = arith.addf %314, %315 : vector<1x32xf32>
    %317 = math.tanh %316 : vector<1x32xf32>
    %c0_149 = arith.constant 0 : index
    %c0_150 = arith.constant 0 : index
    %318 = vector.load %arg19[%c0_149, %c0_150] : memref<32x128xf32, #tpu.memory_space<vmem>>, vector<32x128xf32>
    %cst_151 = arith.constant dense<0.000000e+00> : vector<1x128xf32>
    %319 = tpu.matmul %317, %318, %cst_151 {dimension_numbers = #tpu.dot_dimension_numbers<[1], [0], [0], [1], [0, 0, 1, 1], [], []>} : vector<1x32xf32>, vector<32x128xf32>, vector<1x128xf32> -> vector<1x128xf32>
    %c0_152 = arith.constant 0 : index
    %c0_153 = arith.constant 0 : index
    %320 = vector.load %arg20[%c0_152, %c0_153] : memref<1x128xf32, #tpu.memory_space<vmem>>, vector<1x128xf32>
    %321 = arith.addf %319, %320 : vector<1x128xf32>
    %cst_154 = arith.constant dense<0xFF800000> : vector<1xf32>
    %322 = vector.multi_reduction <maximumf>, %321, %cst_154 [1] : vector<1x128xf32> to vector<1xf32>
    %323 = vector.shape_cast %322 : vector<1xf32> to vector<1x1xf32>
    %324 = vector.broadcast %323 : vector<1x1xf32> to vector<1x128xf32>
    %325 = arith.subf %321, %324 : vector<1x128xf32>
    %326 = math.exp %325 : vector<1x128xf32>
    %cst_155 = arith.constant dense<0.000000e+00> : vector<1xf32>
    %327 = vector.multi_reduction <add>, %326, %cst_155 [1] : vector<1x128xf32> to vector<1xf32>
    %328 = vector.shape_cast %327 : vector<1xf32> to vector<1x1xf32>
    %329 = vector.broadcast %328 : vector<1x1xf32> to vector<1x128xf32>
    %330 = arith.divf %326, %329 : vector<1x128xf32>
    %c0_156 = arith.constant 0 : index
    %c0_157 = arith.constant 0 : index
    %c0_158 = arith.constant 0 : index
    %331 = vector.load %arg21[%c0_156, %c0_157, %c0_158] : memref<1x1x128xf32, #tpu.memory_space<vmem>>, vector<1x1x128xf32>
    %332 = vector.shape_cast %331 : vector<1x1x128xf32> to vector<1x128xf32>
    %333 = vector.shape_cast %330 : vector<1x128xf32> to vector<1x1x128xf32>
    tpu.vector_store %arg21[%c0_156, %c0_157, %c0_158], %333 {strides = array<i32>} : memref<1x1x128xf32, #tpu.memory_space<vmem>>, vector<1x1x128xf32>,
    return
  }
  func.func @transform_0(%arg0: i32) -> (i32, i32, i32) {
    %c0_i32 = arith.constant 0 : i32
    %c0_i32_0 = arith.constant 0 : i32
    %c0_i32_1 = arith.constant 0 : i32
    return %arg0, %c0_i32, %c0_i32_0 : i32, i32, i32
  }
  func.func @transform_1(%arg0: i32) -> (i32, i32, i32) {
    %c0_i32 = arith.constant 0 : i32
    %c0_i32_0 = arith.constant 0 : i32
    %c0_i32_1 = arith.constant 0 : i32
    return %arg0, %c0_i32, %c0_i32_0 : i32, i32, i32
  }
  func.func @transform_2(%arg0: i32) -> (i32, i32) {
    %c0_i32 = arith.constant 0 : i32
    %c0_i32_0 = arith.constant 0 : i32
    %c0_i32_1 = arith.constant 0 : i32
    return %c0_i32, %c0_i32_0 : i32, i32
  }
  func.func @transform_3(%arg0: i32) -> (i32, i32) {
    %c0_i32 = arith.constant 0 : i32
    %c0_i32_0 = arith.constant 0 : i32
    %c0_i32_1 = arith.constant 0 : i32
    return %c0_i32, %c0_i32_0 : i32, i32
  }
  func.func @transform_4(%arg0: i32) -> (i32, i32, i32) {
    %c0_i32 = arith.constant 0 : i32
    %c0_i32_0 = arith.constant 0 : i32
    %c0_i32_1 = arith.constant 0 : i32
    %c0_i32_2 = arith.constant 0 : i32
    return %c0_i32, %c0_i32_0, %c0_i32_1 : i32, i32, i32
  }
  func.func @transform_5(%arg0: i32) -> (i32, i32, i32) {
    %c0_i32 = arith.constant 0 : i32
    %c0_i32_0 = arith.constant 0 : i32
    %c0_i32_1 = arith.constant 0 : i32
    %c0_i32_2 = arith.constant 0 : i32
    return %c0_i32, %c0_i32_0, %c0_i32_1 : i32, i32, i32
  }
  func.func @transform_6(%arg0: i32) -> (i32, i32, i32) {
    %c0_i32 = arith.constant 0 : i32
    %c0_i32_0 = arith.constant 0 : i32
    %c0_i32_1 = arith.constant 0 : i32
    %c0_i32_2 = arith.constant 0 : i32
    return %c0_i32, %c0_i32_0, %c0_i32_1 : i32, i32, i32
  }
  func.func @transform_7(%arg0: i32) -> (i32, i32, i32) {
    %c0_i32 = arith.constant 0 : i32
    %c0_i32_0 = arith.constant 0 : i32
    %c0_i32_1 = arith.constant 0 : i32
    %c0_i32_2 = arith.constant 0 : i32
    return %c0_i32, %c0_i32_0, %c0_i32_1 : i32, i32, i32
  }
  func.func @transform_8(%arg0: i32) -> (i32, i32, i32) {
    %c0_i32 = arith.constant 0 : i32
    %c0_i32_0 = arith.constant 0 : i32
    %c0_i32_1 = arith.constant 0 : i32
    %c0_i32_2 = arith.constant 0 : i32
    return %c0_i32, %c0_i32_0, %c0_i32_1 : i32, i32, i32
  }
  func.func @transform_9(%arg0: i32) -> (i32, i32, i32) {
    %c0_i32 = arith.constant 0 : i32
    %c0_i32_0 = arith.constant 0 : i32
    %c0_i32_1 = arith.constant 0 : i32
    %c0_i32_2 = arith.constant 0 : i32
    return %c0_i32, %c0_i32_0, %c0_i32_1 : i32, i32, i32
  }
  func.func @transform_10(%arg0: i32) -> (i32, i32, i32) {
    %c0_i32 = arith.constant 0 : i32
    %c0_i32_0 = arith.constant 0 : i32
    %c0_i32_1 = arith.constant 0 : i32
    %c0_i32_2 = arith.constant 0 : i32
    return %c0_i32, %c0_i32_0, %c0_i32_1 : i32, i32, i32
  }
  func.func @transform_11(%arg0: i32) -> (i32, i32, i32) {
    %c0_i32 = arith.constant 0 : i32
    %c0_i32_0 = arith.constant 0 : i32
    %c0_i32_1 = arith.constant 0 : i32
    %c0_i32_2 = arith.constant 0 : i32
    return %c0_i32, %c0_i32_0, %c0_i32_1 : i32, i32, i32
  }
  func.func @transform_12(%arg0: i32) -> (i32, i32, i32) {
    %c0_i32 = arith.constant 0 : i32
    %c0_i32_0 = arith.constant 0 : i32
    %c0_i32_1 = arith.constant 0 : i32
    %c0_i32_2 = arith.constant 0 : i32
    return %c0_i32, %c0_i32_0, %c0_i32_1 : i32, i32, i32
  }
  func.func @transform_13(%arg0: i32) -> (i32, i32, i32) {
    %c0_i32 = arith.constant 0 : i32
    %c0_i32_0 = arith.constant 0 : i32
    %c0_i32_1 = arith.constant 0 : i32
    %c0_i32_2 = arith.constant 0 : i32
    return %c0_i32, %c0_i32_0, %c0_i32_1 : i32, i32, i32
  }
  func.func @transform_14(%arg0: i32) -> (i32, i32, i32) {
    %c0_i32 = arith.constant 0 : i32
    %c0_i32_0 = arith.constant 0 : i32
    %c0_i32_1 = arith.constant 0 : i32
    %c0_i32_2 = arith.constant 0 : i32
    return %c0_i32, %c0_i32_0, %c0_i32_1 : i32, i32, i32
  }
  func.func @transform_15(%arg0: i32) -> (i32, i32, i32) {
    %c0_i32 = arith.constant 0 : i32
    %c0_i32_0 = arith.constant 0 : i32
    %c0_i32_1 = arith.constant 0 : i32
    %c0_i32_2 = arith.constant 0 : i32
    return %c0_i32, %c0_i32_0, %c0_i32_1 : i32, i32, i32
  }
  func.func @transform_16(%arg0: i32) -> (i32, i32) {
    %c0_i32 = arith.constant 0 : i32
    %c0_i32_0 = arith.constant 0 : i32
    %c0_i32_1 = arith.constant 0 : i32
    return %c0_i32, %c0_i32_0 : i32, i32
  }
  func.func @transform_17(%arg0: i32) -> (i32, i32) {
    %c0_i32 = arith.constant 0 : i32
    %c0_i32_0 = arith.constant 0 : i32
    %c0_i32_1 = arith.constant 0 : i32
    return %c0_i32, %c0_i32_0 : i32, i32
  }
  func.func @transform_18(%arg0: i32) -> (i32, i32) {
    %c0_i32 = arith.constant 0 : i32
    %c0_i32_0 = arith.constant 0 : i32
    %c0_i32_1 = arith.constant 0 : i32
    return %c0_i32, %c0_i32_0 : i32, i32
  }
  func.func @transform_19(%arg0: i32) -> (i32, i32) {
    %c0_i32 = arith.constant 0 : i32
    %c0_i32_0 = arith.constant 0 : i32
    %c0_i32_1 = arith.constant 0 : i32
    return %c0_i32, %c0_i32_0 : i32, i32
  }
  func.func @transform_20(%arg0: i32) -> (i32, i32, i32) {
    %c0_i32 = arith.constant 0 : i32
    %c0_i32_0 = arith.constant 0 : i32
    %c0_i32_1 = arith.constant 0 : i32
    return %arg0, %c0_i32, %c0_i32_0 : i32, i32, i32
  }
}

</mosaic_0001>

<bundles_post_ra>
// kernel: bert_classifier_forward.1
= control target key start
LH: loop header
LB: loop body
LE: loop exit
PB: predicated region body
PF: predicated region fallthrough
CT: control target
= control target key end

     0   :  { %s3611_s0 = inlined_call_operand.vmem [shape: f32[2,8,32], index: 0, kind: input, shape index: {}]   ;;  %s3612_s1 = inlined_call_operand.vmem [shape: f32[2,1,8], index: 1, kind: input, shape index: {}]   ;;  %s3613_s2 = inlined_call_operand.vmem [shape: f32[1,32], index: 2, kind: input, shape index: {}]   ;;  %s3614_s3 = inlined_call_operand.vmem [shape: f32[1,32], index: 3, kind: input, shape index: {}]   ;;  %s3615_s4 = inlined_call_operand.vmem [shape: f32[2,32,96], index: 4, kind: input, shape index: {}]   ;;  %s3616_s5 = inlined_call_operand.vmem [shape: f32[2,1,96], index: 5, kind: input, shape index: {}]   ;;  %s3617_s6 = inlined_call_operand.vmem [shape: f32[2,32,32], index: 6, kind: input, shape index: {}]   ;;  %s3618_s7 = inlined_call_operand.vmem [shape: f32[2,1,32], index: 7, kind: input, shape index: {}]   ;;  %s3619_s8 = inlined_call_operand.vmem [shape: f32[2,1,32], index: 8, kind: input, shape index: {}]   ;;  %s3620_s9 = inlined_call_operand.vmem [shape: f32[2,1,32], index: 9, kind: input, shape index: {}]   ;;  %s3621_s10 = inlined_call_operand.vmem [shape: f32[2,32,64], index: 10, kind: input, shape index: {}]   ;;  %s3622_s11 = inlined_call_operand.vmem [shape: f32[2,1,64], index: 11, kind: input, shape index: {}]   ;;  %s3623_s12 = inlined_call_operand.vmem [shape: f32[2,64,32], index: 12, kind: input, shape index: {}]   ;;  %s3624_s13 = inlined_call_operand.vmem [shape: f32[2,1,32], index: 13, kind: input, shape index: {}]   ;;  %s3625_s14 = inlined_call_operand.vmem [shape: f32[2,1,32], index: 14, kind: input, shape index: {}]   ;;  %s3626_s15 = inlined_call_operand.vmem [shape: f32[2,1,32], index: 15, kind: input, shape index: {}]   ;;  %s3627_s16 = inlined_call_operand.vmem [shape: f32[32,32], index: 16, kind: input, shape index: {}]   ;;  %s3628_s17 = inlined_call_operand.vmem [shape: f32[1,32], index: 17, kind: input, shape index: {}]   ;;  %s3629_s18 = inlined_call_operand.vmem [shape: f32[32,128], index: 18, kind: input, shape index: {}]   ;;  %s3630_s19 = inlined_call_operand.vmem [shape: f32[1,128], index: 19, kind: input, shape index: {}]   ;;  %s3631_s20 = inlined_call_operand.hbm [shape: f32[2,1,128], index: 20, kind: output, shape index: {}]  }
   0x1   :  { %3642 = sst [smem:[#allocation9_spill]] %s3611_s0 }
   0x2   :  { %3643 = sst [smem:[#allocation10_spill]] %s3612_s1 }
   0x3   :  { %3644 = sst [smem:[#allocation11_spill]] %s3613_s2 }
   0x4   :  { %3645 = sst [smem:[#allocation12_spill]] %s3614_s3 }
   0x5   :  { %3646 = sst [smem:[#allocation13_spill]] %s3615_s4 }
   0x6   :  { %3647 = sst [smem:[#allocation14_spill]] %s3616_s5 }
   0x7   :  { %3648 = sst [smem:[#allocation15_spill]] %s3617_s6 }
   0x8   :  { %25 = vsyncpa [#allocation3], 0 }
   0x9   :  { %27 = vsyncpa [#allocation3 + $0x1], 0  ;;  %s3151_s1 = smov 0   ;;  %s3153_s22 = smov 0  }
   0xa   :  { %s3155_s23 = smov 0   ;;  %s3157_s24 = smov 0  }
   0xb LB: > { %3649 = sst [smem:[#allocation5_spill]] %s3032_s23  ;;  %s3172_s2 = sadd.s32 4294967295, %s3036_s24   ;;  %s3036_s24 = sphi %s3157_s24, %s3667_s24   ;;  %s3032_s23 = sphi %s3155_s23, %s3669_s23   ;;  %s3028_s22 = sphi %s3153_s22, %s3671_s22   ;;  %s3024_s1 = sphi %s3151_s1, %s3670_s1  }
   0xc   : > { %s2567_s25 = sadd.s32 4294967294, %s3036_s24   ;;  %s3176_s3 = sadd.s32 1, %s3036_s24  }
   0xd   : > { %3650 = sst [smem:[#allocation6_spill]] %s3176_s3  ;;  %s470_s26 = sadd.s32 1, %s3032_s23 }
   0xe   : > { %s467_s27 = ssub.s32 %s3036_s24, %s3176_s3  ;;  %p480_p0 = scmp.ne.s32.totalorder %s3032_s23, %s3028_s22 }
   0xf   : > { %p468_p1 = scmp.eq.s32.totalorder %s467_s27, 0  ;;  %p481_p2 = scmp.eq.s32.totalorder %s3172_s2, 1 }
  0x10   : > { %p486_p3 = scmp.ne.s32.totalorder %s3028_s22, %s3024_s1  ;;  %p487_p4 = scmp.eq.s32.totalorder %s2567_s25, 1 }
  0x11   : > { %s3187_s28 = scalar_select %p468_p1, %s3032_s23, %s470_s26  }
  0x12   : > { %p3189_p5 = por %p481_p2, %p480_p0  ;;  %p3193_p6 = por %p487_p4, %p486_p3 }
  0x13   : > { %3651 = sst [smem:[#allocation7_spill]] %s3187_s28  ;;  %p2570_p7 = scmp.ge.s32.totalorder %s3036_s24, 1 }
  0x14   : > { %s3653_s29 = scalar_select %p3193_p6, 1, 0 }
  0x15   : > { %p572_p8 = scmp.lt.s32.totalorder %s3036_s24, 3 }
  0x16   : > { %3654 = sst [smem:[#allocation8_spill]] %s3653_s29 }
  0x17   : > { %p573_p9 = pnand %p2570_p7, %p572_p8 }
  0x18   : > { %p631_p10 = scmp.lt.s32.totalorder (!%p573_p9), %s3172_s2, 1  ;;  %s3655_s26 = sld [smem:[#allocation9_spill]] (!%p573_p9) }
  0x19   : > { %576 = sbr.rel (%p573_p9) target bundleno = 6083 (0x17c3), region = 100  ;;  %s3656_s3 = sld [smem:[#allocation13_spill]] (!%p573_p9) }
  0x1a   : > { %s3658_s23 = sld [smem:[#allocation12_spill]] (!%p573_p9)  ;;  %s3640_s21 = smov (!%p573_p9), 96  }
  0x1b   : > { %s3659_s5 = sld [smem:[#allocation14_spill]] (!%p573_p9)  ;;  %s3638_s28 = smov (!%p573_p9), 48  }
  0x1c   : > { %s3660_s25 = sld [smem:[#allocation10_spill]] (!%p573_p9) }
  0x1d   : > { %s3661_s6 = sld [smem:[#allocation15_spill]] (!%p573_p9) }
  0x1e   : > { %s3201_s30 = scalar_select %p631_p10, %s3172_s2, 1  ;;  %vm642_vm0 = vcmask 261120   ;;  %v3038_v8 = vmov 0.0   ;;  %vm3039_vm1 = vmmov 0   ;;  %vm769_vm2 = vcmask 130048  }
  0x1f   : > { %v674_v7 = vld [vmem:[%s3656_s3 + $0x18] sm:$0xff]  ;;  %2722 = vmatprep.subr.mxu0 %v3038_v8  ;;  %v673_v9 = vld [vmem:[%s3656_s3 + $0x10] sm:$0xff]  ;;  %2730 = vmatprep.mubr.msk.f32.mxu0 %vm3039_vm1, %v3038_v8  ;;  %v672_v10 = vld [vmem:[%s3656_s3 + $0x8] sm:$0xff]  ;;  %vm845_vm3 = vcmask 64512   ;;  %vm1390_vm4 = vcmask 523264   ;;  %vm2477_vm5 = vcmask 1040384  }
  0x20   : > { %s2571_s0 = sshll.u32 %s3201_s30, 3  ;;  %2723 = vmatpush3.msra.mxu0 %v674_v7  ;;  %2733 = vmatprep.subr.mxu1 %v3038_v8  ;;  %v671_v11 = vld [vmem:[%s3656_s3] sm:$0xff] }
  0x21   : > { %s634_s27 = scalar_lea.vmem %s3655_s26, %s2571_s0  ;;  %2724 = vmatprep.subr.mxu0 %v3038_v8  ;;  %2735 = vmatprep.mubr.msk.f32.mxu1 %vm3039_vm1, %v3038_v8  ;;  %s3657_s0 = sld [smem:[#allocation11_spill]]  ;;  %v2573_v18 = vld [vmem:[%s3658_s23] ss:$0 sm:$0xff] }
  0x22   : > { %v638_v0 = vld [vmem:[%s634_s27] sm:$0xff]  ;;  %2725 = vmatpush3.msra.mxu0 %v673_v9  ;;  %s3637_s27 = smov 64   ;;  %s637_s26 = scalar_lea.vmem %s3660_s25, %s3201_s30 }
  0x23   : > { %v643_v1 = vsel %vm642_vm0, %v638_v0, 0.0  ;;  %2726 = vmatprep.subr.mxu0 %v3038_v8  ;;  %v2574_v21 = vld [vmem:[%s3659_s5] ss:$0 sm:$0xff]  ;;  %s3042_s23 = smov 80   ;;  %s3639_s30 = smov 112   ;;  %v758_v55 = vld [vmem:[%s3661_s6 + $0x18] sm:$0xff] }
  0x24   : > { %644 = vadd.xlane.f32.xlu0 %v643_v1  ;;  %2727 = vmatpush3.msra.mxu0 %v672_v10  ;;  %v3258_v28 = vld [vmem:[%s637_s26] ss:$0 sm:$0xff]  ;;  %v756_v59 = vld [vmem:[%s3661_s6 + $0x8] sm:$0xff]  ;;  %v757_v61 = vld [vmem:[%s3661_s6 + $0x10] sm:$0xff]  ;;  %s3665_s25 = smov 64  }
  0x25   : > { %2728 = vmatprep.subr.mxu0 %v3038_v8  ;;  %v755_v60 = vld [vmem:[%s3661_s6] sm:$0xff] }
  0x26   : > { %2729 = vmatpush3.msra.mxu0 %v671_v11 }
  0x27   : > { %2753 = vmatprep.subr.mxu0 %v3038_v8  ;;  %v2572_v16 = vld [vmem:[%s3657_s0] ss:$0 sm:$0xff] }
  0xad   : > { %v645_v2 = vpop.xlane.xlu0 %644 }
  0xae   : > { %v647_v3 = vmul.f32 0.03125, %v645_v2 }
  0xb0   : > { %v648_v4 = vsub.f32 %v638_v0, %v647_v3  ;;  %v2585_v3 = vld [vmem:[%s3618_s7] ss:$0 sm:$0xff] }
  0xb2   : > { %v649_v5 = vmul.f32 %v648_v4, %v648_v4 }
  0xb4   : > { %v650_v6 = vsel %vm642_vm0, %v649_v5, 0.0 }
  0xb5   : > { %651 = vadd.xlane.f32.xlu0 %v650_v6 }
 0x13e   : > { %v652_v12 = vpop.xlane.xlu0 %651 }
 0x13f   : > { %v653_v13 = vmul.f32 0.03125, %v652_v12 }
 0x141   : > { %v654_v14 = vadd.f32 1e-12, %v653_v13 }
 0x143   : > { %2940 = vrsqrt.f32 %v654_v14 }
 0x150   : > { %v2941_v15 = vpop.eup %2940 }
 0x151   : > { %v656_v17 = vmul.f32 %v2941_v15, %v648_v4  ;;  %v1285_v15 = vld [vmem:[%s3621_s10 + $0x18] sm:$0xff] }
 0x153   : > { %v663_v19 = vmul.f32 %v2572_v16, %v656_v17  ;;  %v1284_v16 = vld [vmem:[%s3621_s10 + $0x10] sm:$0xff]  ;;  %v1283_v17 = vld [vmem:[%s3621_s10 + $0x8] sm:$0xff] }
 0x155   : > { %v3237_v20 = vadd.f32 %v2573_v18, %v663_v19  ;;  %v1282_v18 = vld [vmem:[%s3621_s10] sm:$0xff] }
 0x157   : > { %2731 = vmatmul.mubr.msk.f32.vlgmr.msra.gmra.mxu0 %vm642_vm0, %v3237_v20 }
 0x158   : > { %2757 = vmatprep.mubr.msk.f32.mxu0 %vm3039_vm1, %v3038_v8  ;;  %2754 = vmatpush3.msra.mxu0 %v758_v55 }
 0x159   : > { %2755 = vmatprep.subr.mxu0 %v3038_v8 }
 0x15a   : > { %2756 = vmatpush3.msra.mxu0 %v757_v61  ;;  %v2597_v61 = vld [vmem:[%s3656_s3 + $0x38] sm:$0xff] }
 0x15b   : > { %2767 = vmatprep.subr.mxu0 %v3038_v8 }
 0x217   : > { %v751_v22 = vpop.f32.mrf.mxu0 }
 0x218   : > { %v752_v23 = vadd.f32 %v2574_v21, %v751_v22 }
 0x219   : > { %v2732_v24 = vpop.f32.mrf.mxu0 }
 0x21a   : > { %857 = vrot.lane.b32.xlu0 %v752_v23, %s3637_s27  ;;  %767 = vrot.lane.b32.xlu1 %v752_v23, %s3640_s21  ;;  %v759_v26 = vmul.f32 0.25, %v752_v23  ;;  %s3662_s27 = smov 96   ;;  %s629_s21 = sand.u32 1, %s3028_s22  }
 0x21b   : > { %s2491_s29 = scalar_lea.sflag [#allocation3], %s629_s21 }
 0x28c   : > { %v768_v25 = vpop.permute.xlu1 %767  ;;  %v858_v27 = vpop.permute.xlu0 %857 }
 0x28d   : > { %2734 = vmatpush3.xpose.msk.msra.mxu1 %vm769_vm2, %v768_v25  ;;  %v2587_v25 = vld [vmem:[%s3620_s9] ss:$0 sm:$0xff] }
 0x28e   : > { %2738 = vmatprep.subr.mxu1 %v3038_v8 }
 0x290   : > { %2736 = vmatmul.mubr.msk.f32.vlgmr.msra.gmra.mxu1 %vm769_vm2, %v759_v26 }
 0x291   : > { %2739 = vmatpush3.msra.mxu1 %v858_v27  ;;  %2740 = vmatprep.mubr.msk.f32.mxu1 %vm3039_vm1, %v3038_v8 }
 0x292   : > { %2743 = vmatprep.subr.mxu1 %v3038_v8 }
 0x350   : > { %v841_v29 = vpop.f32.mrf.mxu1 }
 0x351   : > { %v842_v30 = vadd.f32 %v3258_v28, %v841_v29  ;;  %v1382_v29 = vld [vmem:[%s3623_s12 + $0x38] sm:$0xff] }
 0x352   : > { %v2737_v31 = vpop.f32.mrf.mxu1 }
 0x353   : > { %v846_v32 = vsel %vm845_vm3, %v842_v30, -inf  ;;  %v1380_v31 = vld [vmem:[%s3623_s12 + $0x28] sm:$0xff] }
 0x354   : > { %847 = vmax.xlane.f32.xlu1 %v846_v32  ;;  %v1379_v32 = vld [vmem:[%s3623_s12 + $0x20] sm:$0xff] }
 0x3dd   : > { %v848_v33 = vpop.xlane.xlu1 %847 }
 0x3de   : > { %v849_v34 = vsub.f32 %v842_v30, %v848_v33  ;;  %v1381_v30 = vld [vmem:[%s3623_s12 + $0x30] sm:$0xff]  ;;  %v1378_v33 = vld [vmem:[%s3623_s12 + $0x18] sm:$0xff] }
 0x3e0   : > { %v850_v35 = vmul.f32 1.442695, %v849_v34  ;;  %v1377_v34 = vld [vmem:[%s3623_s12 + $0x10] sm:$0xff] }
 0x3e2   : > { %2942 = vpow2.f32 %v850_v35  ;;  %v1376_v35 = vld [vmem:[%s3623_s12 + $0x8] sm:$0xff] }
 0x3ef   : > { %v2943_v36 = vpop.eup %2942 }
 0x3f0   : > { %v852_v37 = vsel %vm845_vm3, %v2943_v36, 0.0 }
 0x3f1   : > { %853 = vadd.xlane.f32.xlu0 %v852_v37  ;;  %v2588_v37 = vld [vmem:[%s3622_s11] ss:$0 sm:$0xff] }
 0x407   : > { %935 = vrot.lane.b32.xlu0 %v752_v23, %s3042_s23 }
 0x40b   : > { %933 = vrot.lane.b32.xlu0 %v759_v26, %s3639_s30  ;;  %s2643_s30 = sshll.u32 %s3172_s2, 4 }
 0x40c   : > { %s2501_s26 = scalar_lea.hbm %s3631_s20, %s2643_s30 }
 0x47a   : > { %v854_v38 = vpop.xlane.xlu0 %853 }
 0x47b   : > { %2944 = vrcp.f32 %v854_v38 }
 0x47e   : > { %v936_v40 = vpop.permute.xlu0 %935 }
 0x482   : > { %v934_v42 = vpop.permute.xlu0 %933 }
 0x488   : > { %v2945_v39 = vpop.eup %2944 }
 0x489   : > { %v856_v41 = vmul.f32 %v2945_v39, %v2943_v36  ;;  %v1375_v36 = vld [vmem:[%s3623_s12] sm:$0xff] }
 0x48b   : > { %2741 = vmatmul.mubr.msk.f32.vlgmr.msra.gmra.mxu1 %vm845_vm3, %v856_v41 }
 0x48c   : > { %2744 = vmatpush3.xpose.msk.msra.mxu1 %vm769_vm2, %v936_v40  ;;  %2745 = vmatprep.mubr.msk.f32.mxu1 %vm3039_vm1, %v3038_v8 }
 0x48d   : > { %2748 = vmatprep.subr.mxu1 %v3038_v8 }
 0x48f   : > { %2746 = vmatmul.mubr.msk.f32.vlgmr.msra.gmra.mxu1 %vm769_vm2, %v934_v42 }
 0x490   : > { %2750 = vmatprep.mubr.msk.f32.mxu1 %vm3039_vm1, %v3038_v8 }
 0x54b   : > { %v929_v43 = vpop.f32.mrf.mxu1 }
 0x54d   : > { %v2742_v44 = vpop.f32.mrf.mxu1 }
 0x54f   : > { %v1007_v45 = vpop.f32.mrf.mxu1 }
 0x550   : > { %v1008_v46 = vadd.f32 %v3258_v28, %v1007_v45 }
 0x551   : > { %v2747_v47 = vpop.f32.mrf.mxu1 }
 0x552   : > { %v1011_v48 = vsel %vm845_vm3, %v1008_v46, -inf }
 0x553   : > { %1012 = vmax.xlane.f32.xlu1 %v1011_v48 }
 0x564   : > { %1022 = vrot.lane.b32.xlu1 %v752_v23, %s3638_s28  ;;  %v2586_v23 = vld [vmem:[%s3619_s8] ss:$0 sm:$0xff]  ;;  %s3663_s28 = smov 112  }
 0x5dc   : > { %v1013_v49 = vpop.xlane.xlu1 %1012 }
 0x5dd   : > { %v1014_v50 = vsub.f32 %v1008_v46, %v1013_v49 }
 0x5df   : > { %v1015_v51 = vmul.f32 1.442695, %v1014_v50  ;;  %v2590_v50 = vld [vmem:[%s3624_s13] ss:$0 sm:$0xff] }
 0x5e0   : > { %v1023_v52 = vpop.permute.xlu1 %1022 }
 0x5e1   : > { %2946 = vpow2.f32 %v1015_v51  ;;  %2749 = vmatpush3.msra.mxu1 %v1023_v52 }
 0x5e2   : > { %2760 = vmatprep.subr.mxu1 %v3038_v8 }
 0x5ee   : > { %v2947_v53 = vpop.eup %2946 }
 0x5ef   : > { %v1017_v54 = vsel %vm845_vm3, %v2947_v53, 0.0 }
 0x5f0   : > { %1018 = vadd.xlane.f32.xlu0 %v1017_v54 }
 0x679   : > { %v1019_v56 = vpop.xlane.xlu0 %1018 }
 0x67a   : > { %2948 = vrcp.f32 %v1019_v56 }
 0x687   : > { %v2949_v57 = vpop.eup %2948 }
 0x688   : > { %v1021_v58 = vmul.f32 %v2949_v57, %v2947_v53 }
 0x68a   : > { %2751 = vmatmul.mubr.msk.f32.vlgmr.msra.gmra.mxu1 %vm845_vm3, %v1021_v58 }
 0x68b   : > { %2761 = vmatpush3.msra.mxu1 %v756_v59  ;;  %2764 = vmatprep.mubr.msk.f32.mxu1 %vm3039_vm1, %v3038_v8 }
 0x68c   : > { %2762 = vmatprep.subr.mxu1 %v3038_v8 }
 0x68d   : > { %2763 = vmatpush3.msra.mxu1 %v755_v60 }
 0x68e   : > { %2765 = vmatmul.mubr.msk.f32.vlgmr.msra.gmra.mxu1 %vm769_vm2, %v929_v43  ;;  %2778 = vmatprep.subr.mxu1 %v3038_v8 }
 0x68f   : > { %2794 = vmatprep.mubr.msk.f32.mxu1 %vm3039_vm1, %v3038_v8  ;;  %2779 = vmatpush3.msra.mxu1 %v1382_v29 }
 0x690   : > { %2780 = vmatprep.subr.mxu1 %v3038_v8 }
 0x691   : > { %2781 = vmatpush3.msra.mxu1 %v1381_v30 }
 0x692   : > { %2782 = vmatprep.subr.mxu1 %v3038_v8 }
 0x693   : > { %2783 = vmatpush3.msra.mxu1 %v1380_v31 }
 0x694   : > { %2784 = vmatprep.subr.mxu1 %v3038_v8 }
 0x695   : > { %2785 = vmatpush3.msra.mxu1 %v1379_v32 }
 0x696   : > { %2786 = vmatprep.subr.mxu1 %v3038_v8 }
 0x697   : > { %2787 = vmatpush3.msra.mxu1 %v1378_v33 }
 0x698   : > { %2788 = vmatprep.subr.mxu1 %v3038_v8 }
 0x699   : > { %2789 = vmatpush3.msra.mxu1 %v1377_v34 }
 0x69a   : > { %2790 = vmatprep.subr.mxu1 %v3038_v8 }
 0x69b   : > { %2791 = vmatpush3.msra.mxu1 %v1376_v35 }
 0x69c   : > { %2792 = vmatprep.subr.mxu1 %v3038_v8 }
 0x69d   : > { %2793 = vmatpush3.msra.mxu1 %v1375_v36 }
 0x69e   : > { %2813 = vmatprep.subr.mxu1 %v3038_v8 }
 0x74a   : > { %v1094_v62 = vpop.f32.mrf.mxu1 }
 0x74b   : > { %2758 = vmatmul.mubr.msk.f32.vlgmr.msra.gmra.mxu0 %vm769_vm2, %v1094_v62  ;;  %v2596_v62 = vld [vmem:[%s3656_s3 + $0x30] sm:$0xff] }
 0x74c   : > { %v2752_v63 = vpop.f32.mrf.mxu1  ;;  %2775 = vmatprep.mubr.msk.f32.mxu0 %vm3039_vm1, %v3038_v8  ;;  %2768 = vmatpush3.msra.mxu0 %v1285_v15 }
 0x74d   : > { %2769 = vmatprep.subr.mxu0 %v3038_v8  ;;  %v2595_v63 = vld [vmem:[%s3656_s3 + $0x28] sm:$0xff] }
 0x74e   : > { %v1240_v0 = vpop.f32.mrf.mxu1  ;;  %2770 = vmatpush3.msra.mxu0 %v1284_v16 }
 0x74f   : > { %2771 = vmatprep.subr.mxu0 %v3038_v8 }
 0x750   : > { %v2766_v1 = vpop.f32.mrf.mxu1  ;;  %2772 = vmatpush3.msra.mxu0 %v1283_v17 }
 0x751   : > { %2773 = vmatprep.subr.mxu0 %v3038_v8 }
 0x752   : > { %2774 = vmatpush3.msra.mxu0 %v1282_v18 }
 0x753   : > { %2797 = vmatprep.subr.mxu0 %v3038_v8 }
 0x80b   : > { %v1167_v2 = vpop.f32.mrf.mxu0 }
 0x80c   : > { %v1241_v4 = vadd.f32 %v1240_v0, %v1167_v2  ;;  %v2594_v0 = vld [vmem:[%s3656_s3 + $0x20] sm:$0xff]  ;;  %s3045_s3 = smov [#allocation2]  }
 0x80d   : > { %v2759_v5 = vpop.f32.mrf.mxu0 }
 0x80e   : > { %v1251_v6 = vadd.f32 %v2585_v3, %v1241_v4  ;;  %v2592_v5 = vld [vmem:[%s3625_s14] ss:$0 sm:$0xff] }
 0x810   : > { %v1252_v7 = vadd.f32 %v1251_v6, %v3237_v20 }
 0x812   : > { %v1255_v9 = vsel %vm642_vm0, %v1252_v7, 0.0 }
 0x813   : > { %1256 = vadd.xlane.f32.xlu1 %v1255_v9 }
 0x89c   : > { %v1257_v10 = vpop.xlane.xlu1 %1256 }
 0x89d   : > { %v1258_v11 = vmul.f32 0.03125, %v1257_v10 }
 0x89f   : > { %v1259_v12 = vsub.f32 %v1252_v7, %v1258_v11  ;;  %v2593_v7 = vld [vmem:[%s3626_s15] ss:$0 sm:$0xff]  ;;  %v2599_v11 = vld [vmem:[%s3659_s5 + $0x1] ss:$0 sm:$0xff]  ;;  %s2980_s5 = sshll.u32 %s3045_s3, 4  ;;  %s2981_s5 = int_to_ptr.vmem [resolvable:$false] %s2980_s5 }
 0x8a0   : > { %s2982_s2 = scalar_lea.vmem %s2981_s5, 32 }
 0x8a1   : > { %v1260_v13 = vmul.f32 %v1259_v12, %v1259_v12 }
 0x8a3   : > { %v1261_v14 = vsel %vm642_vm0, %v1260_v13, 0.0 }
 0x8a4   : > { %1262 = vadd.xlane.f32.xlu0 %v1261_v14 }
 0x92d   : > { %v1263_v19 = vpop.xlane.xlu0 %1262 }
 0x92e   : > { %v1264_v20 = vmul.f32 0.03125, %v1263_v19 }
 0x930   : > { %v1265_v21 = vadd.f32 1e-12, %v1264_v20 }
 0x932   : > { %2950 = vrsqrt.f32 %v1265_v21 }
 0x93f   : > { %v2951_v22 = vpop.eup %2950 }
 0x940   : > { %v1267_v24 = vmul.f32 %v2951_v22, %v1259_v12 }
 0x942   : > { %v1274_v26 = vmul.f32 %v2586_v23, %v1267_v24 }
 0x944   : > { %v1281_v27 = vadd.f32 %v2587_v25, %v1274_v26 }
 0x946   : > { %2776 = vmatmul.mubr.msk.f32.vlgmr.msra.gmra.mxu0 %vm642_vm0, %v1281_v27 }
 0x947   : > { %2805 = vmatprep.mubr.msk.f32.mxu0 %vm3039_vm1, %v3038_v8  ;;  %2798 = vmatpush3.msra.mxu0 %v2597_v61 }
 0x948   : > { %2799 = vmatprep.subr.mxu0 %v3038_v8 }
 0x949   : > { %2800 = vmatpush3.msra.mxu0 %v2596_v62 }
 0x94a   : > { %2801 = vmatprep.subr.mxu0 %v3038_v8 }
 0x94b   : > { %2802 = vmatpush3.msra.mxu0 %v2595_v63 }
 0x94c   : > { %2803 = vmatprep.subr.mxu0 %v3038_v8 }
 0x94d   : > { %2804 = vmatpush3.msra.mxu0 %v2594_v0 }
 0x94e   : > { %2808 = vmatprep.subr.mxu0 %v3038_v8 }
 0xa06   : > { %v1362_v38 = vpop.f32.mrf.mxu0 }
 0xa07   : > { %v1363_v39 = vadd.f32 %v2588_v37, %v1362_v38 }
 0xa08   : > { %v2777_v40 = vpop.f32.mrf.mxu0 }
 0xa09   : > { %v1367_v41 = vmul.f32 0.044715, %v1363_v39  ;;  %v1366_v47 = vmul.f32 0.5, %v1363_v39 }
 0xa0b   : > { %v1368_v42 = vmul.f32 %v1367_v41, %v1363_v39 }
 0xa0d   : > { %v1369_v43 = vmul.f32 %v1368_v42, %v1363_v39 }
 0xa0f   : > { %v1370_v44 = vadd.f32 %v1369_v43, %v1363_v39 }
 0xa11   : > { %v1371_v45 = vmul.f32 0.7978846, %v1370_v44 }
 0xa13   : > { %2952 = vtanh.f32 %v1371_v45  ;;  %v2602_v45 = vld [vmem:[%s3661_s6 + $0x28] sm:$0xff] }
 0xa20   : > { %v2953_v46 = vpop.eup %2952 }
 0xa21   : > { %v1373_v48 = vadd.f32 1.0, %v2953_v46  ;;  %v2601_v46 = vld [vmem:[%s3661_s6 + $0x20] sm:$0xff] }
 0xa23   : > { %v1374_v49 = vmul.f32 %v1373_v48, %v1366_v47  ;;  %v2604_v47 = vld [vmem:[%s3661_s6 + $0x38] sm:$0xff]  ;;  %v2603_v48 = vld [vmem:[%s3661_s6 + $0x30] sm:$0xff] }
 0xa25   : > { %2795 = vmatmul.mubr.msk.f32.vlgmr.msra.gmra.mxu1 %vm1390_vm4, %v1374_v49 }
 0xa26   : > { %2815 = vmatprep.mubr.msk.f32.mxu1 %vm3039_vm1, %v3038_v8 }
 0xae5   : > { %v1460_v51 = vpop.f32.mrf.mxu1 }
 0xae6   : > { %v1461_v52 = vadd.f32 %v2590_v50, %v1460_v51 }
 0xae7   : > { %v2796_v53 = vpop.f32.mrf.mxu1 }
 0xae8   : > { %v1464_v54 = vadd.f32 %v1461_v52, %v1281_v27 }
 0xaea   : > { %v1467_v55 = vsel %vm642_vm0, %v1464_v54, 0.0 }
 0xaeb   : > { %1468 = vadd.xlane.f32.xlu0 %v1467_v55 }
 0xb74   : > { %v1469_v56 = vpop.xlane.xlu0 %1468 }
 0xb75   : > { %v1470_v57 = vmul.f32 0.03125, %v1469_v56  ;;  %v2614_v56 = vld [vmem:[%s3618_s7 + $0x1] ss:$0 sm:$0xff] }
 0xb77   : > { %v1471_v58 = vsub.f32 %v1464_v54, %v1470_v57 }
 0xb79   : > { %v1472_v59 = vmul.f32 %v1471_v58, %v1471_v58 }
 0xb7b   : > { %v1473_v60 = vsel %vm642_vm0, %v1472_v59, 0.0 }
 0xb7c   : > { %1474 = vadd.xlane.f32.xlu0 %v1473_v60 }
 0xc05   : > { %v1475_v1 = vpop.xlane.xlu0 %1474 }
 0xc06   : > { %v1476_v2 = vmul.f32 0.03125, %v1475_v1 }
 0xc08   : > { %v1477_v3 = vadd.f32 1e-12, %v1476_v2 }
 0xc0a   : > { %2954 = vrsqrt.f32 %v1477_v3  ;;  %v2622_v3 = vld [vmem:[%s3621_s10 + $0x38] sm:$0xff] }
 0xc17   : > { %v2955_v4 = vpop.eup %2954 }
 0xc18   : > { %v1479_v6 = vmul.f32 %v2955_v4, %v1471_v58  ;;  %v2621_v4 = vld [vmem:[%s3621_s10 + $0x30] sm:$0xff] }
 0xc1a   : > { %v1486_v9 = vmul.f32 %v2592_v5, %v1479_v6  ;;  %v2620_v5 = vld [vmem:[%s3621_s10 + $0x28] sm:$0xff]  ;;  %v2619_v6 = vld [vmem:[%s3621_s10 + $0x20] sm:$0xff] }
 0xc1c   : > { %v3399_v10 = vadd.f32 %v2593_v7, %v1486_v9 }
 0xc1e   : > { %2806 = vmatmul.mubr.msk.f32.vlgmr.msra.gmra.mxu0 %vm642_vm0, %v3399_v10 }
 0xc1f   : > { %2810 = vmatprep.mubr.msk.f32.mxu0 %vm3039_vm1, %v3038_v8 }
 0xcde   : > { %v1576_v12 = vpop.f32.mrf.mxu0 }
 0xcdf   : > { %v1577_v13 = vadd.f32 %v2599_v11, %v1576_v12  ;;  %v2617_v12 = vld [vmem:[%s3619_s8 + $0x1] ss:$0 sm:$0xff] }
 0xce0   : > { %v2807_v14 = vpop.f32.mrf.mxu0 }
 0xce1   : > { %1753 = vrot.lane.b32.xlu1 %v1577_v13, %s3042_s23  ;;  %1587 = vrot.lane.b32.xlu0 %v1577_v13, %s3662_s27  ;;  %v1585_v15 = vmul.f32 0.25, %v1577_v13  ;;  %s3664_s23 = smov 48   ;;  %v2618_v14 = vld [vmem:[%s3620_s9 + $0x1] ss:$0 sm:$0xff]  ;;  %s630_s27 = scalar_lea.vmem [#allocation2], %s629_s21 }
 0xce5   : > { %1751 = vrot.lane.b32.xlu0 %v1585_v15, %s3663_s28  ;;  %s2503_s28 = sshll.u32 %s630_s27, 4  ;;  %s2504_s28 = int_to_ptr.vmem [resolvable:$true] %s2503_s28 }
 0xce6   : > { %s2976_s0 = scalar_lea.vmem %s2504_s28, 16  ;;  %p2983_p0 = scmp.lt.s32.totalorder %s2504_s28, %s2981_s5 }
 0xce7   : > { %p2977_p11 = scmp.ne.s32.totalorder %s2504_s28, %s2976_s0  ;;  %p2984_p1 = scmp.lt.s32.totalorder %s2982_s2, %s2976_s0 }
 0xce9   : > { %p2978_p12 = pnand %p2977_p11, %p3189_p5  ;;  %p2985_p2 = por %p2984_p1, %p2983_p0 }
 0xceb   : > { %p2979_p13 = pneg %p2978_p12 }
 0xced   : > { %p2986_p3 = pnand %p2985_p2, %p2979_p13 }
 0xd53   : > { %v1588_v16 = vpop.permute.xlu0 %1587  ;;  %v1754_v17 = vpop.permute.xlu1 %1753 }
 0xd54   : > { %2809 = vmatpush3.xpose.msk.msra.mxu0 %vm769_vm2, %v1588_v16 }
 0xd55   : > { %2818 = vmatprep.subr.mxu0 %v3038_v8 }
 0xd57   : > { %2811 = vmatmul.mubr.msk.f32.vlgmr.msra.gmra.mxu0 %vm769_vm2, %v1585_v15  ;;  %v1752_v18 = vpop.permute.xlu0 %1751 }
 0xd58   : > { %2819 = vmatpush3.xpose.msk.msra.mxu0 %vm769_vm2, %v1754_v17  ;;  %2820 = vmatprep.mubr.msk.f32.mxu0 %vm3039_vm1, %v3038_v8  ;;  %v2633_v17 = vld [vmem:[%s3623_s12 + $0x78] sm:$0xff] }
 0xd59   : > { %2828 = vmatprep.subr.mxu0 %v3038_v8 }
 0xd5b   : > { %2821 = vmatmul.mubr.msk.f32.vlgmr.msra.gmra.mxu0 %vm769_vm2, %v1752_v18  ;;  %v2632_v18 = vld [vmem:[%s3623_s12 + $0x70] sm:$0xff] }
 0xd5c   : > { %2832 = vmatprep.mubr.msk.f32.mxu0 %vm3039_vm1, %v3038_v8  ;;  %2829 = vmatpush3.msra.mxu0 %v2604_v47 }
 0xd5d   : > { %2830 = vmatprep.subr.mxu0 %v3038_v8 }
 0xd5e   : > { %2831 = vmatpush3.msra.mxu0 %v2603_v48 }
 0xd5f   : > { %2842 = vmatprep.subr.mxu0 %v3038_v8 }
 0xe17   : > { %v1660_v19 = vpop.f32.mrf.mxu0 }
 0xe18   : > { %v1661_v20 = vadd.f32 %v3258_v28, %v1660_v19  ;;  %v2631_v19 = vld [vmem:[%s3623_s12 + $0x68] sm:$0xff] }
 0xe19   : > { %v2812_v21 = vpop.f32.mrf.mxu0 }
 0xe1a   : > { %v1664_v22 = vsel %vm845_vm3, %v1661_v20, -inf  ;;  %v2629_v21 = vld [vmem:[%s3623_s12 + $0x58] sm:$0xff] }
 0xe1b   : > { %1665 = vmax.xlane.f32.xlu0 %v1664_v22  ;;  %v1825_v23 = vpop.f32.mrf.mxu0  ;;  %v2628_v22 = vld [vmem:[%s3623_s12 + $0x50] sm:$0xff] }
 0xe1c   : > { %v1826_v24 = vadd.f32 %v3258_v28, %v1825_v23  ;;  %v2627_v23 = vld [vmem:[%s3623_s12 + $0x48] sm:$0xff] }
 0xe1d   : > { %v2822_v25 = vpop.f32.mrf.mxu0 }
 0xe1e   : > { %v1829_v26 = vsel %vm845_vm3, %v1826_v24, -inf  ;;  %v2624_v25 = vld [vmem:[%s3622_s11 + $0x1] ss:$0 sm:$0xff] }
 0xe1f   : > { %1830 = vmax.xlane.f32.xlu1 %v1829_v26 }
 0xe30   : > { %1840 = vrot.lane.b32.xlu1 %v1577_v13, %s3664_s23 }
 0xea4   : > { %v1666_v27 = vpop.xlane.xlu0 %1665 }
 0xea5   : > { %v1667_v29 = vsub.f32 %v1661_v20, %v1666_v27  ;;  %v2630_v20 = vld [vmem:[%s3623_s12 + $0x60] sm:$0xff] }
 0xea7   : > { %v1668_v30 = vmul.f32 1.442695, %v1667_v29 }
 0xea8   : > { %v1831_v31 = vpop.xlane.xlu1 %1830 }
 0xea9   : > { %2956 = vpow2.f32 %v1668_v30  ;;  %v1832_v32 = vsub.f32 %v1826_v24, %v1831_v31  ;;  %v2626_v24 = vld [vmem:[%s3623_s12 + $0x40] sm:$0xff] }
 0xeab   : > { %v1833_v33 = vmul.f32 1.442695, %v1832_v32 }
 0xeac   : > { %v1841_v42 = vpop.permute.xlu1 %1840 }
 0xead   : > { %2958 = vpow2.f32 %v1833_v33 }
 0xeb6   : > { %v2957_v34 = vpop.eup %2956 }
 0xeb7   : > { %v1670_v35 = vsel %vm845_vm3, %v2957_v34, 0.0 }
 0xeb8   : > { %1671 = vadd.xlane.f32.xlu0 %v1670_v35 }
 0xeba   : > { %v2959_v36 = vpop.eup %2958 }
 0xebb   : > { %v1835_v28 = vsel %vm845_vm3, %v2959_v36, 0.0 }
 0xebc   : > { %1836 = vadd.xlane.f32.xlu0 %v1835_v28 }
 0xed2   : > { %1675 = vrot.lane.b32.xlu0 %v1577_v13, %s3665_s25 }
 0xf41   : > { %v1672_v37 = vpop.xlane.xlu0 %1671 }
 0xf42   : > { %2960 = vrcp.f32 %v1672_v37 }
 0xf45   : > { %v1837_v38 = vpop.xlane.xlu0 %1836 }
 0xf46   : > { %2962 = vrcp.f32 %v1837_v38  ;;  %v2635_v38 = vld [vmem:[%s3624_s13 + $0x1] ss:$0 sm:$0xff] }
 0xf49   : > { %v1676_v39 = vpop.permute.xlu0 %1675 }
 0xf4a   : > { %2814 = vmatpush3.msra.mxu1 %v1676_v39 }
 0xf4b   : > { %2823 = vmatprep.subr.mxu1 %v3038_v8 }
 0xf4f   : > { %v2961_v40 = vpop.eup %2960 }
 0xf50   : > { %v1674_v41 = vmul.f32 %v2961_v40, %v2957_v34 }
 0xf52   : > { %2816 = vmatmul.mubr.msk.f32.vlgmr.msra.gmra.mxu1 %vm845_vm3, %v1674_v41 }
 0xf53   : > { %v2963_v43 = vpop.eup %2962  ;;  %2824 = vmatpush3.msra.mxu1 %v1841_v42  ;;  %2825 = vmatprep.mubr.msk.f32.mxu1 %vm3039_vm1, %v3038_v8 }
 0xf54   : > { %v1839_v44 = vmul.f32 %v2963_v43, %v2959_v36  ;;  %2835 = vmatprep.subr.mxu1 %v3038_v8 }
 0xf56   : > { %2826 = vmatmul.mubr.msk.f32.vlgmr.msra.gmra.mxu1 %vm845_vm3, %v1839_v44 }
 0xf57   : > { %2836 = vmatpush3.msra.mxu1 %v2602_v45  ;;  %2839 = vmatprep.mubr.msk.f32.mxu1 %vm3039_vm1, %v3038_v8 }
 0xf58   : > { %2837 = vmatprep.subr.mxu1 %v3038_v8 }
 0xf59   : > { %2838 = vmatpush3.msra.mxu1 %v2601_v46 }
 0xf5a   : > { %2853 = vmatprep.subr.mxu1 %v3038_v8 }
0x1012   : > { %v1747_v49 = vpop.f32.mrf.mxu1 }
0x1013   : > { %2840 = vmatmul.mubr.msk.f32.vlgmr.msra.gmra.mxu1 %vm769_vm2, %v1747_v49  ;;  %v2323_v49 = vld [vmem:[%s3627_s16 + $0x18] sm:$0xff] }
0x1014   : > { %v2817_v50 = vpop.f32.mrf.mxu1  ;;  %2869 = vmatprep.mubr.msk.f32.mxu1 %vm3039_vm1, %v3038_v8  ;;  %2854 = vmatpush3.msra.mxu1 %v2633_v17 }
0x1015   : > { %2855 = vmatprep.subr.mxu1 %v3038_v8  ;;  %v2322_v50 = vld [vmem:[%s3627_s16 + $0x10] sm:$0xff] }
0x1016   : > { %v1912_v51 = vpop.f32.mrf.mxu1  ;;  %2856 = vmatpush3.msra.mxu1 %v2632_v18 }
0x1017   : > { %2833 = vmatmul.mubr.msk.f32.vlgmr.msra.gmra.mxu0 %vm769_vm2, %v1912_v51  ;;  %2857 = vmatprep.subr.mxu1 %v3038_v8  ;;  %v2321_v51 = vld [vmem:[%s3627_s16 + $0x8] sm:$0xff] }
0x1018   : > { %v2827_v52 = vpop.f32.mrf.mxu1  ;;  %2850 = vmatprep.mubr.msk.f32.mxu0 %vm3039_vm1, %v3038_v8  ;;  %2843 = vmatpush3.msra.mxu0 %v2622_v3 }
0x1019   : > { %2844 = vmatprep.subr.mxu0 %v3038_v8  ;;  %2858 = vmatpush3.msra.mxu1 %v2631_v19  ;;  %v2320_v52 = vld [vmem:[%s3627_s16] sm:$0xff] }
0x101a   : > { %2845 = vmatpush3.msra.mxu0 %v2621_v4  ;;  %2859 = vmatprep.subr.mxu1 %v3038_v8 }
0x101b   : > { %2846 = vmatprep.subr.mxu0 %v3038_v8  ;;  %2860 = vmatpush3.msra.mxu1 %v2630_v20 }
0x101c   : > { %2847 = vmatpush3.msra.mxu0 %v2620_v5  ;;  %2861 = vmatprep.subr.mxu1 %v3038_v8 }
0x101d   : > { %2848 = vmatprep.subr.mxu0 %v3038_v8  ;;  %2862 = vmatpush3.msra.mxu1 %v2629_v21 }
0x101e   : > { %2849 = vmatpush3.msra.mxu0 %v2619_v6  ;;  %2863 = vmatprep.subr.mxu1 %v3038_v8 }
0x101f   : > { %2872 = vmatprep.subr.mxu0 %v3038_v8  ;;  %2864 = vmatpush3.msra.mxu1 %v2628_v22 }
0x1020   : > { %2865 = vmatprep.subr.mxu1 %v3038_v8 }
0x1021   : > { %2866 = vmatpush3.msra.mxu1 %v2627_v23 }
0x1022   : > { %2867 = vmatprep.subr.mxu1 %v3038_v8 }
0x1023   : > { %2868 = vmatpush3.msra.mxu1 %v2626_v24 }
0x10d3   : > { %v2058_v53 = vpop.f32.mrf.mxu1 }
0x10d5   : > { %v2841_v54 = vpop.f32.mrf.mxu1 }
0x10d7   : > { %v1985_v55 = vpop.f32.mrf.mxu0 }
0x10d8   : > { %v2059_v57 = vadd.f32 %v2058_v53, %v1985_v55 }
0x10d9   : > { %v2834_v58 = vpop.f32.mrf.mxu0 }
0x10da   : > { %v2070_v59 = vadd.f32 %v2614_v56, %v2059_v57  ;;  %v2639_v57 = vld [vmem:[%s3625_s14 + $0x1] ss:$0 sm:$0xff] }
0x10dc   : > { %v2071_v60 = vadd.f32 %v2070_v59, %v3399_v10  ;;  %v2640_v59 = vld [vmem:[%s3626_s15 + $0x1] ss:$0 sm:$0xff] }
0x10de   : > { %v2076_v61 = vsel %vm642_vm0, %v2071_v60, 0.0 }
0x10df   : > { %2077 = vadd.xlane.f32.xlu1 %v2076_v61 }
0x1168   : > { %v2078_v62 = vpop.xlane.xlu1 %2077 }
0x1169   : > { %v2079_v63 = vmul.f32 0.03125, %v2078_v62  ;;  %v2402_v62 = vld [vmem:[%s3629_s18 + $0x18] sm:$0xff] }
0x116b   : > { %v2080_v0 = vsub.f32 %v2071_v60, %v2079_v63  ;;  %v2401_v63 = vld [vmem:[%s3629_s18 + $0x10] sm:$0xff] }
0x116d   : > { %v2081_v1 = vmul.f32 %v2080_v0, %v2080_v0 }
0x116f   : > { %v2082_v2 = vsel %vm642_vm0, %v2081_v1, 0.0  ;;  %v2399_v1 = vld [vmem:[%s3629_s18] sm:$0xff] }
0x1170   : > { %2083 = vadd.xlane.f32.xlu0 %v2082_v2  ;;  %v2324_v2 = vld [vmem:[%s3628_s17] sm:$0x1] }
0x11f9   : > { %v2084_v7 = vpop.xlane.xlu0 %2083 }
0x11fa   : > { %v2085_v9 = vmul.f32 0.03125, %v2084_v7  ;;  %v2403_v7 = vld [vmem:[%s3630_s19] sm:$0x1] }
0x11fc   : > { %v2086_v10 = vadd.f32 1e-12, %v2085_v9 }
0x11fe   : > { %2964 = vrsqrt.f32 %v2086_v10 }
0x120b   : > { %v2965_v11 = vpop.eup %2964 }
0x120c   : > { %v2088_v13 = vmul.f32 %v2965_v11, %v2080_v0  ;;  %v2400_v0 = vld [vmem:[%s3629_s18 + $0x8] sm:$0xff] }
0x120e   : > { %v2095_v15 = vmul.f32 %v2617_v12, %v2088_v13 }
0x1210   : > { %v2102_v16 = vadd.f32 %v2618_v14, %v2095_v15 }
0x1212   : > { %2851 = vmatmul.mubr.msk.f32.vlgmr.msra.gmra.mxu0 %vm642_vm0, %v2102_v16 }
0x1213   : > { %2880 = vmatprep.mubr.msk.f32.mxu0 %vm3039_vm1, %v3038_v8  ;;  %2873 = vmatpush3.msra.mxu0 %v2323_v49 }
0x1214   : > { %2874 = vmatprep.subr.mxu0 %v3038_v8 }
0x1215   : > { %2875 = vmatpush3.msra.mxu0 %v2322_v50 }
0x1216   : > { %2876 = vmatprep.subr.mxu0 %v3038_v8 }
0x1217   : > { %2877 = vmatpush3.msra.mxu0 %v2321_v51 }
0x1218   : > { %2878 = vmatprep.subr.mxu0 %v3038_v8 }
0x1219   : > { %2879 = vmatpush3.msra.mxu0 %v2320_v52 }
0x121a   : > { %2883 = vmatprep.subr.mxu0 %v3038_v8 }
0x12d2   : > { %v2185_v26 = vpop.f32.mrf.mxu0 }
0x12d3   : > { %v2186_v27 = vadd.f32 %v2624_v25, %v2185_v26 }
0x12d4   : > { %v2852_v29 = vpop.f32.mrf.mxu0 }
0x12d5   : > { %v2190_v30 = vmul.f32 0.044715, %v2186_v27  ;;  %v2189_v36 = vmul.f32 0.5, %v2186_v27 }
0x12d7   : > { %v2191_v31 = vmul.f32 %v2190_v30, %v2186_v27 }
0x12d9   : > { %v2192_v32 = vmul.f32 %v2191_v31, %v2186_v27 }
0x12db   : > { %v2193_v33 = vadd.f32 %v2192_v32, %v2186_v27 }
0x12dd   : > { %v2194_v34 = vmul.f32 0.7978846, %v2193_v33 }
0x12df   : > { %2966 = vtanh.f32 %v2194_v34 }
0x12ec   : > { %v2967_v35 = vpop.eup %2966 }
0x12ed   : > { %v2196_v28 = vadd.f32 1.0, %v2967_v35 }
0x12ef   : > { %v2197_v37 = vmul.f32 %v2196_v28, %v2189_v36 }
0x12f1   : > { %2870 = vmatmul.mubr.msk.f32.vlgmr.msra.gmra.mxu1 %vm1390_vm4, %v2197_v37 }
0x13b1   : > { %v2284_v39 = vpop.f32.mrf.mxu1 }
0x13b2   : > { %v2285_v40 = vadd.f32 %v2635_v38, %v2284_v39 }
0x13b3   : > { %v2871_v41 = vpop.f32.mrf.mxu1 }
0x13b4   : > { %v2288_v42 = vadd.f32 %v2285_v40, %v2102_v16 }
0x13b6   : > { %v2293_v43 = vsel %vm642_vm0, %v2288_v42, 0.0 }
0x13b7   : > { %2294 = vadd.xlane.f32.xlu0 %v2293_v43 }
0x1440   : > { %v2295_v44 = vpop.xlane.xlu0 %2294 }
0x1441   : > { %v2296_v45 = vmul.f32 0.03125, %v2295_v44 }
0x1443   : > { %v2297_v46 = vsub.f32 %v2288_v42, %v2296_v45 }
0x1445   : > { %v2298_v47 = vmul.f32 %v2297_v46, %v2297_v46 }
0x1447   : > { %v2299_v48 = vsel %vm642_vm0, %v2298_v47, 0.0 }
0x1448   : > { %2300 = vadd.xlane.f32.xlu1 %v2299_v48 }
0x14d1   : > { %v2301_v53 = vpop.xlane.xlu1 %2300 }
0x14d2   : > { %v2302_v54 = vmul.f32 0.03125, %v2301_v53 }
0x14d4   : > { %v2303_v55 = vadd.f32 1e-12, %v2302_v54 }
0x14d6   : > { %2968 = vrsqrt.f32 %v2303_v55 }
0x14e3   : > { %v2969_v56 = vpop.eup %2968 }
0x14e4   : > { %v2305_v58 = vmul.f32 %v2969_v56, %v2297_v46 }
0x14e6   : > { %v2312_v60 = vmul.f32 %v2639_v57, %v2305_v58 }
0x14e8   : > { %v2319_v61 = vadd.f32 %v2640_v59, %v2312_v60 }
0x14ea   : > { %2881 = vmatmul.mubr.msk.f32.vlgmr.msra.gmra.mxu0 %vm642_vm0, %v2319_v61 }
0x14eb   : > { %2891 = vmatprep.mubr.msk.f32.mxu0 %vm3039_vm1, %v3038_v8  ;;  %2884 = vmatpush3.msra.mxu0 %v2402_v62 }
0x14ec   : > { %2885 = vmatprep.subr.mxu0 %v3038_v8 }
0x14ed   : > { %2886 = vmatpush3.msra.mxu0 %v2401_v63 }
0x14ee   : > { %2887 = vmatprep.subr.mxu0 %v3038_v8 }
0x14ef   : > { %2888 = vmatpush3.msra.mxu0 %v2400_v0 }
0x14f0   : > { %2889 = vmatprep.subr.mxu0 %v3038_v8 }
0x14f1   : > { %2890 = vmatpush3.msra.mxu0 %v2399_v1 }
0x15aa   : > { %v2394_v3 = vpop.f32.mrf.mxu0 }
0x15ab   : > { %v2395_v4 = vadd.f32 %v2394_v3, %v2324_v2 }
0x15ac   : > { %v2882_v5 = vpop.f32.mrf.mxu0 }
0x15ad   : > { %2970 = vtanh.f32 %v2395_v4 }
0x15ba   : > { %v2971_v6 = vpop.eup %2970 }
0x15bb   : > { %2892 = vmatmul.mubr.msk.f32.vlgmr.msra.gmra.mxu0 %vm642_vm0, %v2971_v6 }
0x167b   : > { %v2473_v9 = vpop.f32.mrf.mxu0 }
0x167c   : > { %v2474_v8 = vadd.f32 %v2473_v9, %v2403_v7 }
0x167d   : > { %v2893_v10 = vpop.f32.mrf.mxu0 }
0x167e   : > { %v2478_v11 = vsel %vm2477_vm5, %v2474_v8, -inf }
0x167f   : > { %2479 = vmax.xlane.f32.xlu0 %v2478_v11 }
0x1708   : > { %v2480_v12 = vpop.xlane.xlu0 %2479 }
0x1709   : > { %v2481_v13 = vsub.f32 %v2474_v8, %v2480_v12 }
0x170b   : > { %v2482_v14 = vmul.f32 1.442695, %v2481_v13 }
0x170d   : > { %2972 = vpow2.f32 %v2482_v14 }
0x171a   : > { %v2973_v15 = vpop.eup %2972 }
0x171b   : > { %v2484_v16 = vsel %vm2477_vm5, %v2973_v15, 0.0 }
0x171c   : > { %2485 = vadd.xlane.f32.xlu1 %v2484_v16 }
0x17a5   : > { %v2486_v17 = vpop.xlane.xlu1 %2485 }
0x17a6   : > { %2974 = vrcp.f32 %v2486_v17 }
0x17b3   : > { %v2975_v18 = vpop.eup %2974 }
0x17b4   : > { %v2488_v19 = vmul.f32 %v2975_v18, %v2973_v15 }
0x17b6   : > { %2489 = vst [vmem:[%s630_s27] sm:$0x1] %v2488_v19 }
0x17b7   : > { %2989 = shalt.err (!%p2986_p3)
}
0x17b8   : > { %s2990_s6 = scalar_lea.hbm %s2501_s26, 16  ;;  %s2994_s27 = scalar_lea.hbm %s3631_s20, 32 }
0x17b9   : > { %p2991_p4 = scmp.ne.s32.totalorder %s2501_s26, %s2990_s6  ;;  %p2995_p9 = scmp.lt.s32.totalorder %s2501_s26, %s3631_s20 }
0x17ba   : > { %p2996_p10 = scmp.lt.s32.totalorder %s2994_s27, %s2990_s6 }
0x17bb   : > { %p2992_p7 = pnand %p2991_p4, %p3189_p5 }
0x17bc   : > { %p2997_p11 = por %p2996_p10, %p2995_p9 }
0x17bd   : > { %p2993_p8 = pneg %p2992_p7 }
0x17bf   : > { %p2998_p12 = pnand %p2997_p11, %p2993_p8 }
0x17c1   : > { %3001 = shalt.err (!%p2998_p12)
}
0x17c2   : > { %2894 = dma.vmem_to_hbm [thread:$0]  (%p3189_p5), %s2504_s28, 16, %s2501_s26, %s2491_s29  }
0x17c3 PF: > { %p2900_p13 = scmp.ge.s32.totalorder %s3036_s24, 2  ;;  %s2515_s3 = sand.u32 1, %s3024_s1  }
0x17c4   : > { %s2516_s0 = scalar_lea.sflag [#allocation3], %s2515_s3 }
0x17c5   : > { %p2897_p0 = pnand %p2900_p13, %p3193_p6 }
0x17c7   : > { %p2898_p1 = pneg %p2897_p0 }
0x17c9   : > { %3019 = dma.done.wait (%p2898_p1), %s2516_s0, 16  }
0x17ca   : > { %3021 = vsyncadd (%p2898_p1), %s2516_s0, 4294967280  ;;  %s3667_s24 = sld [smem:[#allocation6_spill]]  ;;  %s3670_s1 = smov %s3028_s22 }
0x17cb   : > { %s3668_s6 = sld [smem:[#allocation5_spill]] }
0x17cc   : > { %s3669_s23 = sld [smem:[#allocation7_spill]] }
0x17d0   : > { %p30_p2 = scmp.ge.s32.totalorder %s3667_s24, 4  }
0x17d1   : > { %s3671_s22 = smov %s3668_s6 }
0x17d2   :  { %32 = sbr.rel (!%p30_p2) target bundleno = 11 (0xb), region = 150 }
0x17d7   :  { %2520 = vsyncpa [#allocation3], 1 }
0x17d8   :  { %2522 = vsyncpa [#allocation3 + $0x1], 1 }

</bundles_post_ra>
